<compile_context>
chip_gen: v7x
topology: tpu7x:2x2x1
jax: 0.10.0
libtpu: 0.0.40
codegen_flags: <defaults>
</compile_context>

<pallas_src>
import functools
import math

import jax
import jax.numpy as jnp
from jax import lax
from jax.experimental import pallas as pl
from jax.experimental.pallas import tpu as pltpu

# Test configuration (module spec: z_size=32, n_gaussians=5, n_layers=1;
# hidden default is 256 -- we use 128 here: small but lane-dense).
Z_SIZE = 32
N_HIDDEN = 128
N_GAUSS = 5
N_LAYERS = 1

T_CHUNK_DEFAULT = 4   # small so the chunked-grid carry path is exercised at T=8
B_BLK = 8             # one sublane group per batch block ("parallel" grid axis)


# ----------------------------------------------------------------------------
# Fused LSTM-chunk + MDN-head kernel.  grid = (batch_blocks, T_chunks).
# ----------------------------------------------------------------------------
def _mdnrnn_kernel(x_ref, wih_ref, whh_ref, h0_ref, c0_ref,
                   w1_ref, b1_ref, w2_ref, b2_ref, w3_ref, b3_ref,
                   pi_ref, mu_ref, sigma_ref, hn_ref, cn_ref,
                   gx_sc, y_sc, h_sc, c_sc, *, t_chunk, b_blk, d_in):
    H = N_HIDDEN
    G, Z = N_GAUSS, Z_SIZE
    rows = t_chunk * b_blk
    t_idx = pl.program_id(1)

    # Load the initial recurrent state at the first T-chunk of each batch block.
    @pl.when(t_idx == 0)
    def _():
        h_sc[...] = h0_ref[...]
        c_sc[...] = c0_ref[...]

    # Hoisted input projection for the whole chunk: one bf16 MXU matmul.
    # The LSTM bias is already folded in (ones column of x / bias row of W_ih).
    x_flat = x_ref[...].reshape(rows, d_in)
    gx_sc[...] = jnp.dot(x_flat, wih_ref[...], preferred_element_type=jnp.float32)

    # Sequential recurrence over the chunk.  Gate columns are pre-ordered
    # wrapper-side as [i | f | o | g]: one sigmoid over a contiguous 3H slab,
    # tanh over the last H.  State / update math stays in f32.
    def step(i, carry):
        h, c = carry
        row = pl.multiple_of(i * b_blk, b_blk)
        gates = gx_sc[pl.ds(row, b_blk), :] + jnp.dot(
            h.astype(jnp.bfloat16), whh_ref[...],
            preferred_element_type=jnp.float32)
        ifo = jax.nn.sigmoid(gates[:, 0:3 * H])
        g_g = jnp.tanh(gates[:, 3 * H:4 * H])
        c_new = ifo[:, H:2 * H] * c + ifo[:, 0:H] * g_g
        h_new = ifo[:, 2 * H:3 * H] * jnp.tanh(c_new)
        y_sc[pl.ds(row, b_blk), :] = h_new
        return h_new, c_new

    h_n, c_n = lax.fori_loop(0, t_chunk, step, (h_sc[...], c_sc[...]),
                             unroll=min(t_chunk, 4))     # capped unroll
    h_sc[...] = h_n                                      # carry to next chunk
    c_sc[...] = c_n

    @pl.when(t_idx == pl.num_programs(1) - 1)
    def _():
        hn_ref[...] = h_n
        cn_ref[...] = c_n

    # MDN head on the chunk's y while still VMEM-resident: three separate
    # lane-aligned (H, G*Z) matmuls (no unaligned slices of a fused temp).
    y_bf = y_sc[...].astype(jnp.bfloat16)
    mu = jnp.dot(y_bf, w2_ref[...], preferred_element_type=jnp.float32) + b2_ref[...]
    sg = jnp.dot(y_bf, w3_ref[...], preferred_element_type=jnp.float32) + b3_ref[...]
    pi_raw = jnp.dot(y_bf, w1_ref[...], preferred_element_type=jnp.float32) + b1_ref[...]
    mu_ref[...] = mu.reshape(t_chunk, b_blk, G * Z)
    sigma_ref[...] = jnp.exp(sg).reshape(t_chunk, b_blk, G * Z)

    # Lane-dense softmax over the gaussian axis (columns [g0 z's | g1 z's |...]):
    # max-tree, ONE wide exp, EUP approximate reciprocal, ONE wide store.
    m = pi_raw[:, 0:Z]
    for g in range(1, G):
        m = jnp.maximum(m, pi_raw[:, g * Z:(g + 1) * Z])
    e = jnp.exp(pi_raw - jnp.tile(m, (1, G)))
    denom = e[:, 0:Z]
    for g in range(1, G):
        denom = denom + e[:, g * Z:(g + 1) * Z]
    inv = pl.reciprocal(denom, approx=True)
    pi_ref[...] = (e * jnp.tile(inv, (1, G))).reshape(t_chunk, b_blk, G * Z)


# ----------------------------------------------------------------------------
# Full MDNRNN forward (matches MDNRNN.forward(x, h)).
# ----------------------------------------------------------------------------
def _reorder_ifgo_to_ifog(w):
    i, f, g, o = jnp.split(w, 4, axis=-1)
    return jnp.concatenate([i, f, o, g], axis=-1)


@jax.jit
def mdnrnn_forward(x, h0_l, c0_l, params):
    """x: (B, T, z_size+1); h0_l, c0_l: (n_layers=1, B, H)."""
    (wih, whh, bih, bhh, w1, b1, w2, b2, w3, b3) = params
    B, T, D = x.shape
    H = N_HIDDEN
    G, Z = N_GAUSS, Z_SIZE
    GZ = G * Z

    # Batch padded to sublane multiples; T split into chunks (grid axes).
    BP = ((B + B_BLK - 1) // B_BLK) * B_BLK
    nb = BP // B_BLK
    tc = next(d for d in (T_CHUNK_DEFAULT, 8, 4, 2, 1) if T % d == 0)
    # TODO(synk): mask tail steps instead of shrinking the chunk when T is not
    # divisible by the preferred chunk size at production sequence lengths.
    nt = T // tc
    rows = tc * B_BLK

    pad_b = BP - B
    xp = jnp.pad(x, ((0, pad_b), (0, 0), (0, 0)))
    h0 = jnp.pad(h0_l[0], ((0, pad_b), (0, 0)))
    c0 = jnp.pad(c0_l[0], ((0, pad_b), (0, 0)))

    # Time-major + ones column (folds the LSTM bias into the input projection).
    x_tm = jnp.transpose(xp, (1, 0, 2))                                   # (T,BP,D)
    x_tm = jnp.concatenate([x_tm, jnp.ones((T, BP, 1), x.dtype)], axis=-1)
    x_tm = x_tm.astype(jnp.bfloat16)
    d_in = D + 1

    # Gate reorder [i|f|g|o] -> [i|f|o|g]; weights in bf16 (MXU native);
    # recurrent state and all accumulation stay f32.
    wih_t = jnp.concatenate(
        [_reorder_ifgo_to_ifog(wih.T),
         _reorder_ifgo_to_ifog(bih + bhh)[None, :]], axis=0).astype(jnp.bfloat16)
    whh_t = _reorder_ifgo_to_ifog(whh.T).astype(jnp.bfloat16)
    w1t, w2t, w3t = (w.T.astype(jnp.bfloat16) for w in (w1, w2, w3))
    b1r, b2r, b3r = (b[None, :] for b in (b1, b2, b3))

    w_spec = lambda arr: pl.BlockSpec(arr.shape, lambda b, t: (0, 0))
    in_specs = [
        pl.BlockSpec((tc, B_BLK, d_in), lambda b, t: (t, b, 0)),   # x (pipelined)
        w_spec(wih_t), w_spec(whh_t),
        pl.BlockSpec((B_BLK, H), lambda b, t: (b, 0)),             # h0
        pl.BlockSpec((B_BLK, H), lambda b, t: (b, 0)),             # c0
        w_spec(w1t), w_spec(b1r),
        w_spec(w2t), w_spec(b2r),
        w_spec(w3t), w_spec(b3r),
    ]
    out_specs = (
        pl.BlockSpec((tc, B_BLK, GZ), lambda b, t: (t, b, 0)),     # pi
        pl.BlockSpec((tc, B_BLK, GZ), lambda b, t: (t, b, 0)),     # mu
        pl.BlockSpec((tc, B_BLK, GZ), lambda b, t: (t, b, 0)),     # sigma
        pl.BlockSpec((B_BLK, H), lambda b, t: (b, 0)),             # h_N
        pl.BlockSpec((B_BLK, H), lambda b, t: (b, 0)),             # c_N
    )
    out_shapes = (
        jax.ShapeDtypeStruct((T, BP, GZ), jnp.float32),
        jax.ShapeDtypeStruct((T, BP, GZ), jnp.float32),
        jax.ShapeDtypeStruct((T, BP, GZ), jnp.float32),
        jax.ShapeDtypeStruct((BP, H), jnp.float32),
        jax.ShapeDtypeStruct((BP, H), jnp.float32),
    )
    scratch_shapes = [
        pltpu.VMEM((rows, 4 * H), jnp.float32),   # hoisted input gates (chunk)
        pltpu.VMEM((rows, H), jnp.float32),       # y for the chunk (head LHS)
        pltpu.VMEM((B_BLK, H), jnp.float32),      # h carry across T chunks
        pltpu.VMEM((B_BLK, H), jnp.float32),      # c carry across T chunks
    ]

    # VMEM budget: chunk scratch + double-buffered blocks + resident weights.
    f32b, bf16b = 4, 2
    est = (rows * 4 * H * f32b + rows * H * f32b + 2 * B_BLK * H * f32b
           + 2 * (tc * B_BLK * d_in * bf16b)
           + 2 * 3 * (tc * B_BLK * GZ * f32b)
           + 2 * 4 * (B_BLK * H * f32b)
           + 2 * ((d_in * 4 * H + H * 4 * H + 3 * H * GZ) * bf16b
                  + 3 * GZ * f32b))
    vmem_limit = int(min(max(2 * est + (2 << 20), 16 << 20), 48 << 20))

    kernel = functools.partial(_mdnrnn_kernel, t_chunk=tc, b_blk=B_BLK, d_in=d_in)
    pi_f, mu_f, sg_f, h_n, c_n = pl.pallas_call(
        kernel,
        out_shape=out_shapes,
        grid_spec=pltpu.PrefetchScalarGridSpec(
            num_scalar_prefetch=0,
            grid=(nb, nt),
            in_specs=in_specs,
            out_specs=out_specs,
            scratch_shapes=scratch_shapes),
        compiler_params=pltpu.CompilerParams(
            dimension_semantics=("parallel", "arbitrary"),
            vmem_limit_bytes=vmem_limit),
    )(x_tm, wih_t, whh_t, h0, c0, w1t, b1r, w2t, b2r, w3t, b3r)

    def unflat(a):   # (T, BP, G*Z) time-major -> (B, T, G, Z)
        return jnp.transpose(a[:, :B].reshape(T, B, G, Z), (1, 0, 2, 3))

    return ((unflat(pi_f), unflat(mu_f), unflat(sg_f)),
            (h_n[:B][None], c_n[:B][None]))


# ----------------------------------------------------------------------------
# Pure-JAX f32 reference (matches the PyTorch module numerics).
# ----------------------------------------------------------------------------
def ref_forward(x, h0_l, c0_l, params):
    (wih, whh, bih, bhh, w1, b1, w2, b2, w3, b3) = params
    B, T, _ = x.shape
    H = N_HIDDEN

    def step(carry, x_t):
        h, c = carry
        gates = x_t @ wih.T + h @ whh.T + bih + bhh
        i = jax.nn.sigmoid(gates[:, :H])
        f = jax.nn.sigmoid(gates[:, H:2 * H])
        g = jnp.tanh(gates[:, 2 * H:3 * H])
        o = jax.nn.sigmoid(gates[:, 3 * H:])
        c = f * c + i * g
        h = o * jnp.tanh(c)
        return (h, c), h

    (h_n, c_n), ys = lax.scan(step, (h0_l[0], c0_l[0]),
                              jnp.transpose(x, (1, 0, 2)))
    y = jnp.transpose(ys, (1, 0, 2))                       # (B, T, H)

    def head(w, b):
        return (y.reshape(-1, H) @ w.T + b).reshape(B, T, N_GAUSS, Z_SIZE)

    pi = jax.nn.softmax(head(w1, b1), axis=2)
    mu = head(w2, b2)
    sigma = jnp.exp(head(w3, b3))
    return (pi, mu, sigma), (h_n[None], c_n[None])


# ----------------------------------------------------------------------------
def init_params(key):
    H, Z, G = N_HIDDEN, Z_SIZE, N_GAUSS
    D_in = Z + 1
    ks = jax.random.split(key, 10)
    k_lstm = 1.0 / jnp.sqrt(H)
    k_fc = 1.0 / jnp.sqrt(H)
    u = lambda k, shape, b: jax.random.uniform(k, shape, jnp.float32, -b, b)
    wih = u(ks[0], (4 * H, D_in), k_lstm)
    whh = u(ks[1], (4 * H, H), k_lstm)
    bih = u(ks[2], (4 * H,), k_lstm)
    bhh = u(ks[3], (4 * H,), k_lstm)
    w1 = u(ks[4], (G * Z, H), k_fc)
    b1 = u(ks[5], (G * Z,), k_fc)
    w2 = u(ks[6], (G * Z, H), k_fc)
    b2 = u(ks[7], (G * Z,), k_fc)
    w3 = u(ks[8], (G * Z, H), k_fc)
    b3 = u(ks[9], (G * Z,), k_fc)
    return (wih, whh, bih, bhh, w1, b1, w2, b2, w3, b3)


if __name__ == "__main__":
    B, T = 2, 8
    key = jax.random.PRNGKey(0)
    kp, kx = jax.random.split(key)
    params = init_params(kp)

    x = jax.random.normal(kx, (B, T, Z_SIZE + 1), jnp.float32)
    h0 = jnp.zeros((N_LAYERS, B, N_HIDDEN), jnp.float32)   # init_hidden(bsz)
    c0 = jnp.zeros((N_LAYERS, B, N_HIDDEN), jnp.float32)

    (pi, mu, sigma), (h_n, c_n) = mdnrnn_forward(x, h0, c0, params)
    jax.block_until_ready((pi, mu, sigma, h_n, c_n))

    # Reference is f32; the kernel uses bf16 weights / matmul LHS (per perf
    # review) plus an approximate EUP reciprocal in the pi softmax, so
    # tolerances are the expected bf16 quantization level (not fp32-tight).
    (pi_r, mu_r, sg_r), (h_r, c_r) = ref_forward(x, h0, c0, params)
    checks = [("pi", pi, pi_r, 1e-2), ("mu", mu, mu_r, 3e-2),
              ("sigma", sigma, sg_r, 5e-2), ("h_n", h_n, h_r, 3e-2),
              ("c_n", c_n, c_r, 3e-2)]
    for name, a, b_, tol in checks:
        assert a.shape == b_.shape, (name, a.shape, b_.shape)
        err = float(jnp.max(jnp.abs(a - b_)))
        assert err < tol, f"{name}: max abs err {err} >= {tol}"
    # pi must be a proper mixture distribution over the gaussian axis.
    assert float(jnp.max(jnp.abs(jnp.sum(pi, axis=2) - 1.0))) < 1e-2
    assert pi.shape == (B, T, N_GAUSS, Z_SIZE)
    assert h_n.shape == (N_LAYERS, B, N_HIDDEN)
    print("KERNEL_OK")
</pallas_src>

<mosaic_0001>
module attributes {stable_mosaic.version = 11 : i64} {
  func.func @_mdnrnn_kernel(%arg0: i32, %arg1: i32, %arg2: memref<4x8x34xbf16, #tpu.memory_space<vmem>>, %arg3: memref<34x512xbf16, #tpu.memory_space<vmem>>, %arg4: memref<128x512xbf16, #tpu.memory_space<vmem>>, %arg5: memref<8x128xf32, #tpu.memory_space<vmem>>, %arg6: memref<8x128xf32, #tpu.memory_space<vmem>>, %arg7: memref<128x160xbf16, #tpu.memory_space<vmem>>, %arg8: memref<1x160xf32, #tpu.memory_space<vmem>>, %arg9: memref<128x160xbf16, #tpu.memory_space<vmem>>, %arg10: memref<1x160xf32, #tpu.memory_space<vmem>>, %arg11: memref<128x160xbf16, #tpu.memory_space<vmem>>, %arg12: memref<1x160xf32, #tpu.memory_space<vmem>>, %arg13: memref<4x8x160xf32, #tpu.memory_space<vmem>>, %arg14: memref<4x8x160xf32, #tpu.memory_space<vmem>>, %arg15: memref<4x8x160xf32, #tpu.memory_space<vmem>>, %arg16: memref<8x128xf32, #tpu.memory_space<vmem>>, %arg17: memref<8x128xf32, #tpu.memory_space<vmem>>, %arg18: memref<32x512xf32, #tpu.memory_space<vmem>>, %arg19: memref<32x128xf32, #tpu.memory_space<vmem>>, %arg20: memref<8x128xf32, #tpu.memory_space<vmem>>, %arg21: memref<8x128xf32, #tpu.memory_space<vmem>>) attributes {dimension_semantics = [#tpu.dimension_semantics<parallel>, #tpu.dimension_semantics<arbitrary>], iteration_bounds = array<i64: 1, 2>, scalar_prefetch = 0 : i64, scratch_operands = 4 : i64, tpu.core_type = #tpu.core_type<tc>, window_params = [{transform_indices = @transform_0, window_bounds = array<i64: 4, 8, 34>}, {pipeline_mode = #tpu.pipeline_mode<synchronous>, transform_indices = @transform_1, window_bounds = array<i64: 34, 512>}, {pipeline_mode = #tpu.pipeline_mode<synchronous>, transform_indices = @transform_2, window_bounds = array<i64: 128, 512>}, {transform_indices = @transform_3, window_bounds = array<i64: 8, 128>}, {transform_indices = @transform_4, window_bounds = array<i64: 8, 128>}, {pipeline_mode = #tpu.pipeline_mode<synchronous>, transform_indices = @transform_5, window_bounds = array<i64: 128, 160>}, {pipeline_mode = #tpu.pipeline_mode<synchronous>, transform_indices = @transform_6, window_bounds = array<i64: 1, 160>}, {pipeline_mode = #tpu.pipeline_mode<synchronous>, transform_indices = @transform_7, window_bounds = array<i64: 128, 160>}, {pipeline_mode = #tpu.pipeline_mode<synchronous>, transform_indices = @transform_8, window_bounds = array<i64: 1, 160>}, {pipeline_mode = #tpu.pipeline_mode<synchronous>, transform_indices = @transform_9, window_bounds = array<i64: 128, 160>}, {pipeline_mode = #tpu.pipeline_mode<synchronous>, transform_indices = @transform_10, window_bounds = array<i64: 1, 160>}, {transform_indices = @transform_11, window_bounds = array<i64: 4, 8, 160>}, {transform_indices = @transform_12, window_bounds = array<i64: 4, 8, 160>}, {transform_indices = @transform_13, window_bounds = array<i64: 4, 8, 160>}, {transform_indices = @transform_14, window_bounds = array<i64: 8, 128>}, {transform_indices = @transform_15, window_bounds = array<i64: 8, 128>}]} {
    %c0_i32 = arith.constant 0 : i32
    %0 = arith.cmpi eq, %arg1, %c0_i32 : i32
    %1 = arith.extui %0 : i1 to i32
    %c0_i32_0 = arith.constant 0 : i32
    %2 = arith.cmpi ne, %1, %c0_i32_0 : i32
    scf.if %2 {
      %c0_71 = arith.constant 0 : index
      %c0_72 = arith.constant 0 : index
      %167 = vector.load %arg5[%c0_71, %c0_72] : memref<8x128xf32, #tpu.memory_space<vmem>>, vector<8x128xf32>
      %c0_73 = arith.constant 0 : index
      %c0_74 = arith.constant 0 : index
      %168 = vector.load %arg20[%c0_73, %c0_74] : memref<8x128xf32, #tpu.memory_space<vmem>>, vector<8x128xf32>
      tpu.vector_store %arg20[%c0_73, %c0_74], %167 {strides = array<i32>} : memref<8x128xf32, #tpu.memory_space<vmem>>, vector<8x128xf32>,
      %c0_75 = arith.constant 0 : index
      %c0_76 = arith.constant 0 : index
      %169 = vector.load %arg6[%c0_75, %c0_76] : memref<8x128xf32, #tpu.memory_space<vmem>>, vector<8x128xf32>
      %c0_77 = arith.constant 0 : index
      %c0_78 = arith.constant 0 : index
      %170 = vector.load %arg21[%c0_77, %c0_78] : memref<8x128xf32, #tpu.memory_space<vmem>>, vector<8x128xf32>
      tpu.vector_store %arg21[%c0_77, %c0_78], %169 {strides = array<i32>} : memref<8x128xf32, #tpu.memory_space<vmem>>, vector<8x128xf32>,
    } else {
    }
    %c0 = arith.constant 0 : index
    %c0_1 = arith.constant 0 : index
    %c0_2 = arith.constant 0 : index
    %3 = vector.load %arg2[%c0, %c0_1, %c0_2] : memref<4x8x34xbf16, #tpu.memory_space<vmem>>, vector<4x8x34xbf16>
    %4 = vector.shape_cast %3 : vector<4x8x34xbf16> to vector<32x34xbf16>
    %c0_3 = arith.constant 0 : index
    %c0_4 = arith.constant 0 : index
    %5 = vector.load %arg3[%c0_3, %c0_4] : memref<34x512xbf16, #tpu.memory_space<vmem>>, vector<34x512xbf16>
    %cst = arith.constant dense<0.000000e+00> : vector<32x512xf32>
    %6 = tpu.matmul %4, %5, %cst {dimension_numbers = #tpu.dot_dimension_numbers<[1], [0], [0], [1], [0, 0, 1, 1], [], []>} : vector<32x34xbf16>, vector<34x512xbf16>, vector<32x512xf32> -> vector<32x512xf32>
    %c0_5 = arith.constant 0 : index
    %c0_6 = arith.constant 0 : index
    %7 = vector.load %arg18[%c0_5, %c0_6] : memref<32x512xf32, #tpu.memory_space<vmem>>, vector<32x512xf32>
    tpu.vector_store %arg18[%c0_5, %c0_6], %6 {strides = array<i32>} : memref<32x512xf32, #tpu.memory_space<vmem>>, vector<32x512xf32>,
    %c0_7 = arith.constant 0 : index
    %c0_8 = arith.constant 0 : index
    %8 = vector.load %arg20[%c0_7, %c0_8] : memref<8x128xf32, #tpu.memory_space<vmem>>, vector<8x128xf32>
    %c0_9 = arith.constant 0 : index
    %c0_10 = arith.constant 0 : index
    %9 = vector.load %arg21[%c0_9, %c0_10] : memref<8x128xf32, #tpu.memory_space<vmem>>, vector<8x128xf32>
    %c0_i32_11 = arith.constant 0 : i32
    %c8_i32 = arith.constant 8 : i32
    %10 = arith.muli %c0_i32_11, %c8_i32 : i32
    %11 = tpu.assume_multiple %10, 8 : i32
    %12 = arith.index_cast %11 : i32 to index
    %c0_12 = arith.constant 0 : index
    %13 = vector.load %arg18[%12, %c0_12] : memref<32x512xf32, #tpu.memory_space<vmem>>, vector<8x512xf32>
    %14 = arith.truncf %8 : vector<8x128xf32> to vector<8x128xbf16>
    %c0_13 = arith.constant 0 : index
    %c0_14 = arith.constant 0 : index
    %15 = vector.load %arg4[%c0_13, %c0_14] : memref<128x512xbf16, #tpu.memory_space<vmem>>, vector<128x512xbf16>
    %cst_15 = arith.constant dense<0.000000e+00> : vector<8x512xf32>
    %16 = tpu.matmul %14, %15, %cst_15 {dimension_numbers = #tpu.dot_dimension_numbers<[1], [0], [0], [1], [0, 0, 1, 1], [], []>} : vector<8x128xbf16>, vector<128x512xbf16>, vector<8x512xf32> -> vector<8x512xf32>
    %17 = arith.addf %13, %16 : vector<8x512xf32>
    %18 = vector.extract_strided_slice %17 {offsets = [0, 0], sizes = [8, 384], strides = [1, 1]} : vector<8x512xf32> to vector<8x384xf32>
    %19 = arith.negf %18 : vector<8x384xf32>
    %20 = math.exp %19 : vector<8x384xf32>
    %cst_16 = arith.constant 1.000000e+00 : f32
    %21 = vector.broadcast %cst_16 : f32 to vector<8x384xf32>
    %22 = arith.addf %21, %20 : vector<8x384xf32>
    %23 = arith.divf %21, %22 : vector<8x384xf32>
    %24 = vector.extract_strided_slice %17 {offsets = [0, 384], sizes = [8, 128], strides = [1, 1]} : vector<8x512xf32> to vector<8x128xf32>
    %25 = math.tanh %24 : vector<8x128xf32>
    %26 = vector.extract_strided_slice %23 {offsets = [0, 128], sizes = [8, 128], strides = [1, 1]} : vector<8x384xf32> to vector<8x128xf32>
    %27 = arith.mulf %26, %9 : vector<8x128xf32>
    %28 = vector.extract_strided_slice %23 {offsets = [0, 0], sizes = [8, 128], strides = [1, 1]} : vector<8x384xf32> to vector<8x128xf32>
    %29 = arith.mulf %28, %25 : vector<8x128xf32>
    %30 = arith.addf %27, %29 : vector<8x128xf32>
    %31 = vector.extract_strided_slice %23 {offsets = [0, 256], sizes = [8, 128], strides = [1, 1]} : vector<8x384xf32> to vector<8x128xf32>
    %32 = math.tanh %30 : vector<8x128xf32>
    %33 = arith.mulf %31, %32 : vector<8x128xf32>
    %34 = arith.index_cast %11 : i32 to index
    %c0_17 = arith.constant 0 : index
    %35 = vector.load %arg19[%34, %c0_17] : memref<32x128xf32, #tpu.memory_space<vmem>>, vector<8x128xf32>
    tpu.vector_store %arg19[%34, %c0_17], %33 {strides = array<i32>} : memref<32x128xf32, #tpu.memory_space<vmem>>, vector<8x128xf32>,
    %c1_i32 = arith.constant 1 : i32
    %c8_i32_18 = arith.constant 8 : i32
    %36 = arith.muli %c1_i32, %c8_i32_18 : i32
    %37 = tpu.assume_multiple %36, 8 : i32
    %38 = arith.index_cast %37 : i32 to index
    %c0_19 = arith.constant 0 : index
    %39 = vector.load %arg18[%38, %c0_19] : memref<32x512xf32, #tpu.memory_space<vmem>>, vector<8x512xf32>
    %40 = arith.truncf %33 : vector<8x128xf32> to vector<8x128xbf16>
    %c0_20 = arith.constant 0 : index
    %c0_21 = arith.constant 0 : index
    %41 = vector.load %arg4[%c0_20, %c0_21] : memref<128x512xbf16, #tpu.memory_space<vmem>>, vector<128x512xbf16>
    %cst_22 = arith.constant dense<0.000000e+00> : vector<8x512xf32>
    %42 = tpu.matmul %40, %41, %cst_22 {dimension_numbers = #tpu.dot_dimension_numbers<[1], [0], [0], [1], [0, 0, 1, 1], [], []>} : vector<8x128xbf16>, vector<128x512xbf16>, vector<8x512xf32> -> vector<8x512xf32>
    %43 = arith.addf %39, %42 : vector<8x512xf32>
    %44 = vector.extract_strided_slice %43 {offsets = [0, 0], sizes = [8, 384], strides = [1, 1]} : vector<8x512xf32> to vector<8x384xf32>
    %45 = arith.negf %44 : vector<8x384xf32>
    %46 = math.exp %45 : vector<8x384xf32>
    %cst_23 = arith.constant 1.000000e+00 : f32
    %47 = vector.broadcast %cst_23 : f32 to vector<8x384xf32>
    %48 = arith.addf %47, %46 : vector<8x384xf32>
    %49 = arith.divf %47, %48 : vector<8x384xf32>
    %50 = vector.extract_strided_slice %43 {offsets = [0, 384], sizes = [8, 128], strides = [1, 1]} : vector<8x512xf32> to vector<8x128xf32>
    %51 = math.tanh %50 : vector<8x128xf32>
    %52 = vector.extract_strided_slice %49 {offsets = [0, 128], sizes = [8, 128], strides = [1, 1]} : vector<8x384xf32> to vector<8x128xf32>
    %53 = arith.mulf %52, %30 : vector<8x128xf32>
    %54 = vector.extract_strided_slice %49 {offsets = [0, 0], sizes = [8, 128], strides = [1, 1]} : vector<8x384xf32> to vector<8x128xf32>
    %55 = arith.mulf %54, %51 : vector<8x128xf32>
    %56 = arith.addf %53, %55 : vector<8x128xf32>
    %57 = vector.extract_strided_slice %49 {offsets = [0, 256], sizes = [8, 128], strides = [1, 1]} : vector<8x384xf32> to vector<8x128xf32>
    %58 = math.tanh %56 : vector<8x128xf32>
    %59 = arith.mulf %57, %58 : vector<8x128xf32>
    %60 = arith.index_cast %37 : i32 to index
    %c0_24 = arith.constant 0 : index
    %61 = vector.load %arg19[%60, %c0_24] : memref<32x128xf32, #tpu.memory_space<vmem>>, vector<8x128xf32>
    tpu.vector_store %arg19[%60, %c0_24], %59 {strides = array<i32>} : memref<32x128xf32, #tpu.memory_space<vmem>>, vector<8x128xf32>,
    %c2_i32 = arith.constant 2 : i32
    %c8_i32_25 = arith.constant 8 : i32
    %62 = arith.muli %c2_i32, %c8_i32_25 : i32
    %63 = tpu.assume_multiple %62, 8 : i32
    %64 = arith.index_cast %63 : i32 to index
    %c0_26 = arith.constant 0 : index
    %65 = vector.load %arg18[%64, %c0_26] : memref<32x512xf32, #tpu.memory_space<vmem>>, vector<8x512xf32>
    %66 = arith.truncf %59 : vector<8x128xf32> to vector<8x128xbf16>
    %c0_27 = arith.constant 0 : index
    %c0_28 = arith.constant 0 : index
    %67 = vector.load %arg4[%c0_27, %c0_28] : memref<128x512xbf16, #tpu.memory_space<vmem>>, vector<128x512xbf16>
    %cst_29 = arith.constant dense<0.000000e+00> : vector<8x512xf32>
    %68 = tpu.matmul %66, %67, %cst_29 {dimension_numbers = #tpu.dot_dimension_numbers<[1], [0], [0], [1], [0, 0, 1, 1], [], []>} : vector<8x128xbf16>, vector<128x512xbf16>, vector<8x512xf32> -> vector<8x512xf32>
    %69 = arith.addf %65, %68 : vector<8x512xf32>
    %70 = vector.extract_strided_slice %69 {offsets = [0, 0], sizes = [8, 384], strides = [1, 1]} : vector<8x512xf32> to vector<8x384xf32>
    %71 = arith.negf %70 : vector<8x384xf32>
    %72 = math.exp %71 : vector<8x384xf32>
    %cst_30 = arith.constant 1.000000e+00 : f32
    %73 = vector.broadcast %cst_30 : f32 to vector<8x384xf32>
    %74 = arith.addf %73, %72 : vector<8x384xf32>
    %75 = arith.divf %73, %74 : vector<8x384xf32>
    %76 = vector.extract_strided_slice %69 {offsets = [0, 384], sizes = [8, 128], strides = [1, 1]} : vector<8x512xf32> to vector<8x128xf32>
    %77 = math.tanh %76 : vector<8x128xf32>
    %78 = vector.extract_strided_slice %75 {offsets = [0, 128], sizes = [8, 128], strides = [1, 1]} : vector<8x384xf32> to vector<8x128xf32>
    %79 = arith.mulf %78, %56 : vector<8x128xf32>
    %80 = vector.extract_strided_slice %75 {offsets = [0, 0], sizes = [8, 128], strides = [1, 1]} : vector<8x384xf32> to vector<8x128xf32>
    %81 = arith.mulf %80, %77 : vector<8x128xf32>
    %82 = arith.addf %79, %81 : vector<8x128xf32>
    %83 = vector.extract_strided_slice %75 {offsets = [0, 256], sizes = [8, 128], strides = [1, 1]} : vector<8x384xf32> to vector<8x128xf32>
    %84 = math.tanh %82 : vector<8x128xf32>
    %85 = arith.mulf %83, %84 : vector<8x128xf32>
    %86 = arith.index_cast %63 : i32 to index
    %c0_31 = arith.constant 0 : index
    %87 = vector.load %arg19[%86, %c0_31] : memref<32x128xf32, #tpu.memory_space<vmem>>, vector<8x128xf32>
    tpu.vector_store %arg19[%86, %c0_31], %85 {strides = array<i32>} : memref<32x128xf32, #tpu.memory_space<vmem>>, vector<8x128xf32>,
    %c3_i32 = arith.constant 3 : i32
    %c8_i32_32 = arith.constant 8 : i32
    %88 = arith.muli %c3_i32, %c8_i32_32 : i32
    %89 = tpu.assume_multiple %88, 8 : i32
    %90 = arith.index_cast %89 : i32 to index
    %c0_33 = arith.constant 0 : index
    %91 = vector.load %arg18[%90, %c0_33] : memref<32x512xf32, #tpu.memory_space<vmem>>, vector<8x512xf32>
    %92 = arith.truncf %85 : vector<8x128xf32> to vector<8x128xbf16>
    %c0_34 = arith.constant 0 : index
    %c0_35 = arith.constant 0 : index
    %93 = vector.load %arg4[%c0_34, %c0_35] : memref<128x512xbf16, #tpu.memory_space<vmem>>, vector<128x512xbf16>
    %cst_36 = arith.constant dense<0.000000e+00> : vector<8x512xf32>
    %94 = tpu.matmul %92, %93, %cst_36 {dimension_numbers = #tpu.dot_dimension_numbers<[1], [0], [0], [1], [0, 0, 1, 1], [], []>} : vector<8x128xbf16>, vector<128x512xbf16>, vector<8x512xf32> -> vector<8x512xf32>
    %95 = arith.addf %91, %94 : vector<8x512xf32>
    %96 = vector.extract_strided_slice %95 {offsets = [0, 0], sizes = [8, 384], strides = [1, 1]} : vector<8x512xf32> to vector<8x384xf32>
    %97 = arith.negf %96 : vector<8x384xf32>
    %98 = math.exp %97 : vector<8x384xf32>
    %cst_37 = arith.constant 1.000000e+00 : f32
    %99 = vector.broadcast %cst_37 : f32 to vector<8x384xf32>
    %100 = arith.addf %99, %98 : vector<8x384xf32>
    %101 = arith.divf %99, %100 : vector<8x384xf32>
    %102 = vector.extract_strided_slice %95 {offsets = [0, 384], sizes = [8, 128], strides = [1, 1]} : vector<8x512xf32> to vector<8x128xf32>
    %103 = math.tanh %102 : vector<8x128xf32>
    %104 = vector.extract_strided_slice %101 {offsets = [0, 128], sizes = [8, 128], strides = [1, 1]} : vector<8x384xf32> to vector<8x128xf32>
    %105 = arith.mulf %104, %82 : vector<8x128xf32>
    %106 = vector.extract_strided_slice %101 {offsets = [0, 0], sizes = [8, 128], strides = [1, 1]} : vector<8x384xf32> to vector<8x128xf32>
    %107 = arith.mulf %106, %103 : vector<8x128xf32>
    %108 = arith.addf %105, %107 : vector<8x128xf32>
    %109 = vector.extract_strided_slice %101 {offsets = [0, 256], sizes = [8, 128], strides = [1, 1]} : vector<8x384xf32> to vector<8x128xf32>
    %110 = math.tanh %108 : vector<8x128xf32>
    %111 = arith.mulf %109, %110 : vector<8x128xf32>
    %112 = arith.index_cast %89 : i32 to index
    %c0_38 = arith.constant 0 : index
    %113 = vector.load %arg19[%112, %c0_38] : memref<32x128xf32, #tpu.memory_space<vmem>>, vector<8x128xf32>
    tpu.vector_store %arg19[%112, %c0_38], %111 {strides = array<i32>} : memref<32x128xf32, #tpu.memory_space<vmem>>, vector<8x128xf32>,
    %c4_i32 = arith.constant 4 : i32
    %c0_39 = arith.constant 0 : index
    %c0_40 = arith.constant 0 : index
    %114 = vector.load %arg20[%c0_39, %c0_40] : memref<8x128xf32, #tpu.memory_space<vmem>>, vector<8x128xf32>
    tpu.vector_store %arg20[%c0_39, %c0_40], %111 {strides = array<i32>} : memref<8x128xf32, #tpu.memory_space<vmem>>, vector<8x128xf32>,
    %c0_41 = arith.constant 0 : index
    %c0_42 = arith.constant 0 : index
    %115 = vector.load %arg21[%c0_41, %c0_42] : memref<8x128xf32, #tpu.memory_space<vmem>>, vector<8x128xf32>
    tpu.vector_store %arg21[%c0_41, %c0_42], %108 {strides = array<i32>} : memref<8x128xf32, #tpu.memory_space<vmem>>, vector<8x128xf32>,
    %c1_i32_43 = arith.constant 1 : i32
    %116 = arith.cmpi eq, %arg1, %c1_i32_43 : i32
    %117 = arith.extui %116 : i1 to i32
    %c0_i32_44 = arith.constant 0 : i32
    %118 = arith.cmpi ne, %117, %c0_i32_44 : i32
    scf.if %118 {
      %c0_71 = arith.constant 0 : index
      %c0_72 = arith.constant 0 : index
      %167 = vector.load %arg16[%c0_71, %c0_72] : memref<8x128xf32, #tpu.memory_space<vmem>>, vector<8x128xf32>
      tpu.vector_store %arg16[%c0_71, %c0_72], %111 {strides = array<i32>} : memref<8x128xf32, #tpu.memory_space<vmem>>, vector<8x128xf32>,
      %c0_73 = arith.constant 0 : index
      %c0_74 = arith.constant 0 : index
      %168 = vector.load %arg17[%c0_73, %c0_74] : memref<8x128xf32, #tpu.memory_space<vmem>>, vector<8x128xf32>
      tpu.vector_store %arg17[%c0_73, %c0_74], %108 {strides = array<i32>} : memref<8x128xf32, #tpu.memory_space<vmem>>, vector<8x128xf32>,
    } else {
    }
    %c0_45 = arith.constant 0 : index
    %c0_46 = arith.constant 0 : index
    %119 = vector.load %arg19[%c0_45, %c0_46] : memref<32x128xf32, #tpu.memory_space<vmem>>, vector<32x128xf32>
    %120 = arith.truncf %119 : vector<32x128xf32> to vector<32x128xbf16>
    %c0_47 = arith.constant 0 : index
    %c0_48 = arith.constant 0 : index
    %121 = vector.load %arg9[%c0_47, %c0_48] : memref<128x160xbf16, #tpu.memory_space<vmem>>, vector<128x160xbf16>
    %cst_49 = arith.constant dense<0.000000e+00> : vector<32x160xf32>
    %122 = tpu.matmul %120, %121, %cst_49 {dimension_numbers = #tpu.dot_dimension_numbers<[1], [0], [0], [1], [0, 0, 1, 1], [], []>} : vector<32x128xbf16>, vector<128x160xbf16>, vector<32x160xf32> -> vector<32x160xf32>
    %c0_50 = arith.constant 0 : index
    %c0_51 = arith.constant 0 : index
    %123 = vector.load %arg10[%c0_50, %c0_51] : memref<1x160xf32, #tpu.memory_space<vmem>>, vector<1x160xf32>
    %124 = vector.broadcast %123 : vector<1x160xf32> to vector<32x160xf32>
    %125 = arith.addf %122, %124 : vector<32x160xf32>
    %c0_52 = arith.constant 0 : index
    %c0_53 = arith.constant 0 : index
    %126 = vector.load %arg11[%c0_52, %c0_53] : memref<128x160xbf16, #tpu.memory_space<vmem>>, vector<128x160xbf16>
    %cst_54 = arith.constant dense<0.000000e+00> : vector<32x160xf32>
    %127 = tpu.matmul %120, %126, %cst_54 {dimension_numbers = #tpu.dot_dimension_numbers<[1], [0], [0], [1], [0, 0, 1, 1], [], []>} : vector<32x128xbf16>, vector<128x160xbf16>, vector<32x160xf32> -> vector<32x160xf32>
    %c0_55 = arith.constant 0 : index
    %c0_56 = arith.constant 0 : index
    %128 = vector.load %arg12[%c0_55, %c0_56] : memref<1x160xf32, #tpu.memory_space<vmem>>, vector<1x160xf32>
    %129 = vector.broadcast %128 : vector<1x160xf32> to vector<32x160xf32>
    %130 = arith.addf %127, %129 : vector<32x160xf32>
    %c0_57 = arith.constant 0 : index
    %c0_58 = arith.constant 0 : index
    %131 = vector.load %arg7[%c0_57, %c0_58] : memref<128x160xbf16, #tpu.memory_space<vmem>>, vector<128x160xbf16>
    %cst_59 = arith.constant dense<0.000000e+00> : vector<32x160xf32>
    %132 = tpu.matmul %120, %131, %cst_59 {dimension_numbers = #tpu.dot_dimension_numbers<[1], [0], [0], [1], [0, 0, 1, 1], [], []>} : vector<32x128xbf16>, vector<128x160xbf16>, vector<32x160xf32> -> vector<32x160xf32>
    %c0_60 = arith.constant 0 : index
    %c0_61 = arith.constant 0 : index
    %133 = vector.load %arg8[%c0_60, %c0_61] : memref<1x160xf32, #tpu.memory_space<vmem>>, vector<1x160xf32>
    %134 = vector.broadcast %133 : vector<1x160xf32> to vector<32x160xf32>
    %135 = arith.addf %132, %134 : vector<32x160xf32>
    %136 = vector.shape_cast %125 : vector<32x160xf32> to vector<4x8x160xf32>
    %c0_62 = arith.constant 0 : index
    %c0_63 = arith.constant 0 : index
    %c0_64 = arith.constant 0 : index
    %137 = vector.load %arg14[%c0_62, %c0_63, %c0_64] : memref<4x8x160xf32, #tpu.memory_space<vmem>>, vector<4x8x160xf32>
    tpu.vector_store %arg14[%c0_62, %c0_63, %c0_64], %136 {strides = array<i32>} : memref<4x8x160xf32, #tpu.memory_space<vmem>>, vector<4x8x160xf32>,
    %138 = math.exp %130 : vector<32x160xf32>
    %139 = vector.shape_cast %138 : vector<32x160xf32> to vector<4x8x160xf32>
    %c0_65 = arith.constant 0 : index
    %c0_66 = arith.constant 0 : index
    %c0_67 = arith.constant 0 : index
    %140 = vector.load %arg15[%c0_65, %c0_66, %c0_67] : memref<4x8x160xf32, #tpu.memory_space<vmem>>, vector<4x8x160xf32>
    tpu.vector_store %arg15[%c0_65, %c0_66, %c0_67], %139 {strides = array<i32>} : memref<4x8x160xf32, #tpu.memory_space<vmem>>, vector<4x8x160xf32>,
    %141 = vector.extract_strided_slice %135 {offsets = [0, 0], sizes = [32, 32], strides = [1, 1]} : vector<32x160xf32> to vector<32x32xf32>
    %142 = vector.extract_strided_slice %135 {offsets = [0, 32], sizes = [32, 32], strides = [1, 1]} : vector<32x160xf32> to vector<32x32xf32>
    %143 = arith.maximumf %141, %142 : vector<32x32xf32>
    %144 = vector.extract_strided_slice %135 {offsets = [0, 64], sizes = [32, 32], strides = [1, 1]} : vector<32x160xf32> to vector<32x32xf32>
    %145 = arith.maximumf %143, %144 : vector<32x32xf32>
    %146 = vector.extract_strided_slice %135 {offsets = [0, 96], sizes = [32, 32], strides = [1, 1]} : vector<32x160xf32> to vector<32x32xf32>
    %147 = arith.maximumf %145, %146 : vector<32x32xf32>
    %148 = vector.extract_strided_slice %135 {offsets = [0, 128], sizes = [32, 32], strides = [1, 1]} : vector<32x160xf32> to vector<32x32xf32>
    %149 = arith.maximumf %147, %148 : vector<32x32xf32>
    %150 = tpu.concatenate %149, %149, %149, %149, %149 in 1 : vector<32x32xf32>, vector<32x32xf32>, vector<32x32xf32>, vector<32x32xf32>, vector<32x32xf32> -> vector<32x160xf32>
    %151 = arith.subf %135, %150 : vector<32x160xf32>
    %152 = math.exp %151 : vector<32x160xf32>
    %153 = vector.extract_strided_slice %152 {offsets = [0, 0], sizes = [32, 32], strides = [1, 1]} : vector<32x160xf32> to vector<32x32xf32>
    %154 = vector.extract_strided_slice %152 {offsets = [0, 32], sizes = [32, 32], strides = [1, 1]} : vector<32x160xf32> to vector<32x32xf32>
    %155 = arith.addf %153, %154 : vector<32x32xf32>
    %156 = vector.extract_strided_slice %152 {offsets = [0, 64], sizes = [32, 32], strides = [1, 1]} : vector<32x160xf32> to vector<32x32xf32>
    %157 = arith.addf %155, %156 : vector<32x32xf32>
    %158 = vector.extract_strided_slice %152 {offsets = [0, 96], sizes = [32, 32], strides = [1, 1]} : vector<32x160xf32> to vector<32x32xf32>
    %159 = arith.addf %157, %158 : vector<32x32xf32>
    %160 = vector.extract_strided_slice %152 {offsets = [0, 128], sizes = [32, 32], strides = [1, 1]} : vector<32x160xf32> to vector<32x32xf32>
    %161 = arith.addf %159, %160 : vector<32x32xf32>
    %162 = tpu.reciprocal %161 {approx = true} : vector<32x32xf32> -> vector<32x32xf32>
    %163 = tpu.concatenate %162, %162, %162, %162, %162 in 1 : vector<32x32xf32>, vector<32x32xf32>, vector<32x32xf32>, vector<32x32xf32>, vector<32x32xf32> -> vector<32x160xf32>
    %164 = arith.mulf %152, %163 : vector<32x160xf32>
    %165 = vector.shape_cast %164 : vector<32x160xf32> to vector<4x8x160xf32>
    %c0_68 = arith.constant 0 : index
    %c0_69 = arith.constant 0 : index
    %c0_70 = arith.constant 0 : index
    %166 = vector.load %arg13[%c0_68, %c0_69, %c0_70] : memref<4x8x160xf32, #tpu.memory_space<vmem>>, vector<4x8x160xf32>
    tpu.vector_store %arg13[%c0_68, %c0_69, %c0_70], %165 {strides = array<i32>} : memref<4x8x160xf32, #tpu.memory_space<vmem>>, vector<4x8x160xf32>,
    return
  }
  func.func @transform_0(%arg0: i32, %arg1: i32) -> (i32, i32, i32) {
    %c0_i32 = arith.constant 0 : i32
    %c0_i32_0 = arith.constant 0 : i32
    return %arg1, %arg0, %c0_i32 : i32, i32, i32
  }
  func.func @transform_1(%arg0: i32, %arg1: i32) -> (i32, i32) {
    %c0_i32 = arith.constant 0 : i32
    %c0_i32_0 = arith.constant 0 : i32
    %c0_i32_1 = arith.constant 0 : i32
    return %c0_i32, %c0_i32_0 : i32, i32
  }
  func.func @transform_2(%arg0: i32, %arg1: i32) -> (i32, i32) {
    %c0_i32 = arith.constant 0 : i32
    %c0_i32_0 = arith.constant 0 : i32
    %c0_i32_1 = arith.constant 0 : i32
    return %c0_i32, %c0_i32_0 : i32, i32
  }
  func.func @transform_3(%arg0: i32, %arg1: i32) -> (i32, i32) {
    %c0_i32 = arith.constant 0 : i32
    %c0_i32_0 = arith.constant 0 : i32
    return %arg0, %c0_i32 : i32, i32
  }
  func.func @transform_4(%arg0: i32, %arg1: i32) -> (i32, i32) {
    %c0_i32 = arith.constant 0 : i32
    %c0_i32_0 = arith.constant 0 : i32
    return %arg0, %c0_i32 : i32, i32
  }
  func.func @transform_5(%arg0: i32, %arg1: i32) -> (i32, i32) {
    %c0_i32 = arith.constant 0 : i32
    %c0_i32_0 = arith.constant 0 : i32
    %c0_i32_1 = arith.constant 0 : i32
    return %c0_i32, %c0_i32_0 : i32, i32
  }
  func.func @transform_6(%arg0: i32, %arg1: i32) -> (i32, i32) {
    %c0_i32 = arith.constant 0 : i32
    %c0_i32_0 = arith.constant 0 : i32
    %c0_i32_1 = arith.constant 0 : i32
    return %c0_i32, %c0_i32_0 : i32, i32
  }
  func.func @transform_7(%arg0: i32, %arg1: i32) -> (i32, i32) {
    %c0_i32 = arith.constant 0 : i32
    %c0_i32_0 = arith.constant 0 : i32
    %c0_i32_1 = arith.constant 0 : i32
    return %c0_i32, %c0_i32_0 : i32, i32
  }
  func.func @transform_8(%arg0: i32, %arg1: i32) -> (i32, i32) {
    %c0_i32 = arith.constant 0 : i32
    %c0_i32_0 = arith.constant 0 : i32
    %c0_i32_1 = arith.constant 0 : i32
    return %c0_i32, %c0_i32_0 : i32, i32
  }
  func.func @transform_9(%arg0: i32, %arg1: i32) -> (i32, i32) {
    %c0_i32 = arith.constant 0 : i32
    %c0_i32_0 = arith.constant 0 : i32
    %c0_i32_1 = arith.constant 0 : i32
    return %c0_i32, %c0_i32_0 : i32, i32
  }
  func.func @transform_10(%arg0: i32, %arg1: i32) -> (i32, i32) {
    %c0_i32 = arith.constant 0 : i32
    %c0_i32_0 = arith.constant 0 : i32
    %c0_i32_1 = arith.constant 0 : i32
    return %c0_i32, %c0_i32_0 : i32, i32
  }
  func.func @transform_11(%arg0: i32, %arg1: i32) -> (i32, i32, i32) {
    %c0_i32 = arith.constant 0 : i32
    %c0_i32_0 = arith.constant 0 : i32
    return %arg1, %arg0, %c0_i32 : i32, i32, i32
  }
  func.func @transform_12(%arg0: i32, %arg1: i32) -> (i32, i32, i32) {
    %c0_i32 = arith.constant 0 : i32
    %c0_i32_0 = arith.constant 0 : i32
    return %arg1, %arg0, %c0_i32 : i32, i32, i32
  }
  func.func @transform_13(%arg0: i32, %arg1: i32) -> (i32, i32, i32) {
    %c0_i32 = arith.constant 0 : i32
    %c0_i32_0 = arith.constant 0 : i32
    return %arg1, %arg0, %c0_i32 : i32, i32, i32
  }
  func.func @transform_14(%arg0: i32, %arg1: i32) -> (i32, i32) {
    %c0_i32 = arith.constant 0 : i32
    %c0_i32_0 = arith.constant 0 : i32
    return %arg0, %c0_i32 : i32, i32
  }
  func.func @transform_15(%arg0: i32, %arg1: i32) -> (i32, i32) {
    %c0_i32 = arith.constant 0 : i32
    %c0_i32_0 = arith.constant 0 : i32
    return %arg0, %c0_i32 : i32, i32
  }
}

</mosaic_0001>

<bundles_post_ra>
// kernel: mdnrnn_forward.1
= control target key start
LH: loop header
LB: loop body
LE: loop exit
PB: predicated region body
PF: predicated region fallthrough
CT: control target
= control target key end

     0   :  { %s3808_s18 = smov 0   ;;  %s3810_s19 = smov 0   ;;  %s4657_s0 = inlined_call_operand.vmem [shape: bf16[8,8,34], index: 0, kind: input, shape index: {}]   ;;  %s4658_s1 = inlined_call_operand.vmem [shape: bf16[34,512], index: 1, kind: input, shape index: {}]   ;;  %s4659_s2 = inlined_call_operand.vmem [shape: bf16[128,512], index: 2, kind: input, shape index: {}]   ;;  %s4660_s3 = inlined_call_operand.vmem [shape: f32[8,128], index: 3, kind: input, shape index: {}]   ;;  %s4661_s4 = inlined_call_operand.vmem [shape: f32[8,128], index: 4, kind: input, shape index: {}]   ;;  %s4662_s5 = inlined_call_operand.vmem [shape: bf16[128,160], index: 5, kind: input, shape index: {}]   ;;  %s4663_s6 = inlined_call_operand.vmem [shape: f32[1,160], index: 6, kind: input, shape index: {}]   ;;  %s4664_s7 = inlined_call_operand.vmem [shape: bf16[128,160], index: 7, kind: input, shape index: {}]   ;;  %s4665_s8 = inlined_call_operand.vmem [shape: f32[1,160], index: 8, kind: input, shape index: {}]   ;;  %s4666_s9 = inlined_call_operand.vmem [shape: bf16[128,160], index: 9, kind: input, shape index: {}]   ;;  %s4667_s10 = inlined_call_operand.vmem [shape: f32[1,160], index: 10, kind: input, shape index: {}]   ;;  %s4668_s11 = inlined_call_operand.vmem [shape: f32[8,8,160], index: 11, kind: output, shape index: {0}]   ;;  %s4669_s12 = inlined_call_operand.vmem [shape: f32[8,8,160], index: 12, kind: output, shape index: {1}]   ;;  %s4670_s13 = inlined_call_operand.vmem [shape: f32[8,8,160], index: 13, kind: output, shape index: {2}]   ;;  %s4671_s14 = inlined_call_operand.vmem [shape: f32[8,128], index: 14, kind: output, shape index: {3}]   ;;  %s4672_s15 = inlined_call_operand.vmem [shape: f32[8,128], index: 15, kind: output, shape index: {4}]  }
   0x1   :  { %4678 = sst [smem:[#allocation9_spill]] %s4667_s10  ;;  %s3812_s20 = smov 0  }
   0x2 LB: > { %4679 = sst [smem:[#allocation6_spill]] %s3718_s19  ;;  %s35_s21 = sadd.s32 1, %s3718_s19  ;;  %s3722_s20 = sphi %s3812_s20, %s26_s20   ;;  %s3718_s19 = sphi %s3810_s19, %s4687_s19   ;;  %s3714_s18 = sphi %s3808_s18, %s4686_s18  }
   0x3   : > { %4680 = sst [smem:[#allocation7_spill]] %s3722_s20  ;;  %p3201_p0 = scmp.ge.s32.totalorder %s3722_s20, 1 }
   0x4   : > { %p36_p1 = scmp.ge.s32.totalorder %s35_s21, 2  ;;  %p488_p2 = scmp.lt.s32.totalorder %s3722_s20, 3 }
   0x6   : > { %s4689_s21 = smov (%p36_p1, %s35_s21), 0  ;;  %p489_p3 = pnand %p3201_p0, %p488_p2 }
   0x7   : > { %4681 = sst [smem:[#allocation8_spill]] %s4689_s21  ;;  %s3202_s22 = sshll.u32 (!%p489_p3), %s3714_s18, 2 }
   0x8   : > { %492 = sbr.rel (%p489_p3) target bundleno = 1945 (0x799), region = 64  ;;  %p581_p4 = scmp.lt.s32.totalorder (!%p489_p3), %s3202_s22, 7 }
   0x9   : > { %p3213_p5 = scmp.ne.s32.totalorder (!%p489_p3), %s3714_s18, 0 }
   0xf   : > { %s4691_s22 = smov (!%p581_p4, %s3202_s22), 7  ;;  %642 = sbr.rel (%p3213_p5) target bundleno = 22 (0x16), region = 68 }
  0x10   : > { %s3203_s23 = sshll.u32 %s4691_s22, 2  ;;  %s3427_s24 = sshll.u32 %s4691_s22, 4  ;;  %v643_v0 = vld [vmem:[%s4660_s3] sm:$0xff] (!%p3213_p5) }
  0x11   : > { %s3832_s27 = scalar_lea.vmem %s4657_s0, %s3203_s23  ;;  %s3837_s30 = scalar_lea.vmem %s4668_s11, %s3427_s24  ;;  %v645_v1 = vld [vmem:[%s4661_s4] sm:$0xff] (!%p3213_p5)  ;;  %644 = vst [vmem:[#allocation4] sm:$0xff] (!%p3213_p5), %v643_v0 }
  0x12   : > { %s3842_s21 = scalar_lea.vmem %s4669_s12, %s3427_s24  ;;  %s3847_s10 = scalar_lea.vmem %s4670_s13, %s3427_s24  ;;  %646 = vst [vmem:[#allocation5] sm:$0xff] (!%p3213_p5), %v645_v1 }
  0x16 PF: > { %v3458_v2 = vld [vmem:[%s4658_s1 + $0x4] ss:$16 sps:$4 sm:$0xff]   ;;  %v4675_v4 = vmov 0   ;;  %v3462_v5 = vld [vmem:[%s4658_s1] ss:$16 sps:$4 sm:$0xff]   ;;  %vm728_vm0 = vcmask 1040384  }
  0x17   : > { %v3862_v3 = vld [vmem:[%s4659_s2 + $0x4] ss:$16 sps:$4 sm:$0xff]   ;;  %773 = vmatprep.mubr.bf16.mxu1 %v4675_v4  ;;  %1097 = vmatprep.mubr.bf16.mxu0 %v4675_v4  ;;  %v3872_v6 = vld [vmem:[%s4659_s2] ss:$16 sps:$4 sm:$0xff]   ;;  %v3478_v17 = vld [vmem:[%s4658_s1 + $0xc] ss:$16 sps:$4 sm:$0xff]  }
  0x18   : > { %741 = vmatprep.subr.bf16.mxu1 %v3458_v2  ;;  %1065 = vmatprep.subr.bf16.mxu0 %v3862_v3  ;;  %v3464_v7 = vld [vmem:[%s4658_s1 + $0x24] ss:$16 sps:$4 sm:$0xff]   ;;  %v3468_v9 = vld [vmem:[%s4658_s1 + $0x20] ss:$16 sps:$4 sm:$0xff]   ;;  %v3476_v20 = vld [vmem:[%s4658_s1 + $0x8] ss:$16 sps:$4 sm:$0xff]  }
  0x19   : > { %742 = vmatpush1.bf16.msra.mxu1 %v3462_v5  ;;  %1066 = vmatpush1.bf16.msra.mxu0 %v3872_v6  ;;  %v3882_v8 = vld [vmem:[%s4659_s2 + $0x24] ss:$16 sps:$4 sm:$0xff]   ;;  %v3890_v10 = vld [vmem:[%s4659_s2 + $0x20] ss:$16 sps:$4 sm:$0xff]   ;;  %vm721_vm1 = vcmask 277504   ;;  %v3488_v30 = vld [vmem:[%s3832_s27 + $0x8] sm:$0xff]  }
  0x1a   : > { %743 = vmatprep.subr.bf16.mxu1 %v3464_v7  ;;  %v659_v11 = vld [vmem:[%s4658_s1 + $0x40] sm:$0x11]  ;;  %1067 = vmatprep.subr.bf16.mxu0 %v3882_v8  ;;  %v3487_v23 = vld [vmem:[%s4658_s1 + $0x2c] ss:$16 sps:$4 sm:$0xff]   ;;  %v3485_v26 = vld [vmem:[%s4658_s1 + $0x28] ss:$16 sps:$4 sm:$0xff]  }
  0x1b   : > { %v3225_v12 = vcombine.high %v659_v11, %v659_v11  ;;  %v3899_v13 = vld [vmem:[%s4659_s2 + $0x44] ss:$16 sps:$4 sm:$0xff]   ;;  %v3224_v14 = vcombine.low %v659_v11, %v659_v11  ;;  %v3905_v15 = vld [vmem:[%s4659_s2 + $0x40] ss:$16 sps:$4 sm:$0xff]   ;;  %v660_v25 = vld [vmem:[%s4658_s1 + $0x48] sm:$0x11] }
  0x1c   : > { %v3475_v18 = vld [vmem:[%s3832_s27] sm:$0xff]   ;;  %v3227_v28 = vcombine.high %v660_v25, %v660_v25  ;;  %v3226_v29 = vcombine.low %v660_v25, %v660_v25  ;;  %v3975_v34 = vld [vmem:[%s4659_s2 + $0xc] ss:$16 sps:$4 sm:$0xff]   ;;  %v3994_v37 = vld [vmem:[%s4659_s2 + $0x8] ss:$16 sps:$4 sm:$0xff]   ;;  %p3374_p6 = scmp.ne.s32.totalorder %s3714_s18, 1 }
  0x1d   : > { %744 = vmatpush1.bf16.msra.mxu1 %v3468_v9  ;;  %1068 = vmatpush1.bf16.msra.mxu0 %v3890_v10  ;;  %v730_v16 = vsel %vm728_vm0, %v3224_v14, 0  ;;  %v3917_v19 = vld [vmem:[%s4659_s2 + $0x64] ss:$16 sps:$4 sm:$0xff]   ;;  %v3925_v21 = vld [vmem:[%s4659_s2 + $0x60] ss:$16 sps:$4 sm:$0xff]  }
  0x1e   : > { %3228 = vmatprep.subr.msk.bf16.mxu1 %vm728_vm0, %v3225_v12  ;;  %1069 = vmatprep.subr.bf16.mxu0 %v3899_v13  ;;  %v3931_v22 = vld [vmem:[%s4659_s2 + $0x84] ss:$16 sps:$4 sm:$0xff]   ;;  %v3941_v24 = vld [vmem:[%s4659_s2 + $0x80] ss:$16 sps:$4 sm:$0xff]   ;;  %v736_v32 = vsel %vm728_vm0, %v3226_v29, 0 }
  0x1f   : > { %v3954_v27 = vld [vmem:[%s4659_s2 + $0xa4] ss:$16 sps:$4 sm:$0xff]   ;;  %v3962_v31 = vld [vmem:[%s4659_s2 + $0xa0] ss:$16 sps:$4 sm:$0xff]   ;;  %v4007_v40 = vld [vmem:[%s4659_s2 + $0x2c] ss:$16 sps:$4 sm:$0xff]  }
  0x20   : > { %v3970_v33 = vld [vmem:[%s4659_s2 + $0xc4] ss:$16 sps:$4 sm:$0xff]   ;;  %v3982_v35 = vld [vmem:[%s4659_s2 + $0xc0] ss:$16 sps:$4 sm:$0xff]   ;;  %v4015_v42 = vld [vmem:[%s4659_s2 + $0x28] ss:$16 sps:$4 sm:$0xff]  }
  0x21   : > { %746 = vmatpush1.bf16.msra.mxu1 %v730_v16  ;;  %1070 = vmatpush1.bf16.msra.mxu0 %v3905_v15  ;;  %v3989_v36 = vld [vmem:[%s4659_s2 + $0xe4] ss:$16 sps:$4 sm:$0xff]   ;;  %v4000_v38 = vld [vmem:[%s4659_s2 + $0xe0] ss:$16 sps:$4 sm:$0xff]   ;;  %v4021_v43 = vld [vmem:[%s4659_s2 + $0x4c] ss:$16 sps:$4 sm:$0xff]  }
  0x22   : > { %794 = vmatprep.subr.bf16.mxu1 %v3478_v17  ;;  %1071 = vmatprep.subr.bf16.mxu0 %v3917_v19  ;;  %v863_v39 = vld [vmem:[#allocation4] sm:$0xff]  ;;  %v4029_v44 = vld [vmem:[%s4659_s2 + $0x48] ss:$16 sps:$4 sm:$0xff]   ;;  %v4036_v45 = vld [vmem:[%s4659_s2 + $0x6c] ss:$16 sps:$4 sm:$0xff]  }
  0x23   : > { %v872_v41 = vpack.c.bf16 %v863_v39, %v863_v39  ;;  %v4045_v46 = vld [vmem:[%s4659_s2 + $0x68] ss:$16 sps:$4 sm:$0xff]   ;;  %v4052_v47 = vld [vmem:[%s4659_s2 + $0x8c] ss:$16 sps:$4 sm:$0xff]  }
  0x24   : > { %3229 = vmatmul.mubr.msk.bf16.vlgmr.msra.gmra.mrb[0].mxu1 %vm721_vm1, %v3475_v18  ;;  %v4060_v48 = vld [vmem:[%s4659_s2 + $0x88] ss:$16 sps:$4 sm:$0xff]   ;;  %v4066_v49 = vld [vmem:[%s4659_s2 + $0xac] ss:$16 sps:$4 sm:$0xff]  }
  0x25   : > { %795 = vmatpush1.bf16.msra.mxu1 %v3476_v20  ;;  %1072 = vmatpush1.bf16.msra.mxu0 %v3925_v21  ;;  %v4074_v50 = vld [vmem:[%s4659_s2 + $0xa8] ss:$16 sps:$4 sm:$0xff]   ;;  %v4080_v51 = vld [vmem:[%s4659_s2 + $0xcc] ss:$16 sps:$4 sm:$0xff]  }
  0x26   : > { %1073 = vmatprep.subr.bf16.mxu0 %v3931_v22  ;;  %796 = vmatprep.subr.bf16.mxu1 %v3487_v23  ;;  %v4088_v52 = vld [vmem:[%s4659_s2 + $0xc8] ss:$16 sps:$4 sm:$0xff]   ;;  %v4094_v53 = vld [vmem:[%s4659_s2 + $0xec] ss:$16 sps:$4 sm:$0xff]  }
  0x27   : > { %783 = vmatprep.mubr.bf16.mxu1 %v4675_v4  ;;  %v4102_v54 = vld [vmem:[%s4659_s2 + $0xe8] ss:$16 sps:$4 sm:$0xff]  }
  0x29   : > { %1074 = vmatpush1.bf16.msra.mxu0 %v3941_v24  ;;  %797 = vmatpush1.bf16.msra.mxu1 %v3485_v26 }
  0x2a   : > { %1075 = vmatprep.subr.bf16.mxu0 %v3954_v27  ;;  %3231 = vmatprep.subr.msk.bf16.mxu1 %vm728_vm0, %v3227_v28 }
  0x2c   : > { %3230 = vmatmul.mubr.msk.bf16.gmra.mrb[4].mxu1 %vm721_vm1, %v3488_v30 }
  0x2d   : > { %1076 = vmatpush1.bf16.msra.mxu0 %v3962_v31  ;;  %799 = vmatpush1.bf16.msra.mxu1 %v736_v32 }
  0x2e   : > { %1077 = vmatprep.subr.bf16.mxu0 %v3970_v33  ;;  %826 = vmatprep.mubr.bf16.mxu1 %v4675_v4 }
  0x2f   : > { %1106 = vmatprep.subr.bf16.mxu1 %v3975_v34 }
  0x31   : > { %1078 = vmatpush1.bf16.msra.mxu0 %v3982_v35 }
  0x32   : > { %1079 = vmatprep.subr.bf16.mxu0 %v3989_v36 }
  0x34   : > { %3232 = vmatmul.mubr.msk.bf16.vlgmr.msra.gmra.mrb[8].mxu1 %vm721_vm1, %v3475_v18 }
  0x35   : > { %1107 = vmatpush1.bf16.msra.mxu1 %v3994_v37  ;;  %1080 = vmatpush1.bf16.msra.mxu0 %v4000_v38 }
  0x36   : > { %1108 = vmatprep.subr.bf16.mxu1 %v4007_v40  ;;  %836 = vmatprep.mubr.bf16.mxu1 %v4675_v4 }
  0x37   : > { %1376 = vmatprep.subr.bf16.mxu0 %v3862_v3 }
  0x38   : > { %1098 = vmatmul.mubr.bf16.vlgmr.msra.gmra.mrb[0].mxu0 %v872_v41 }
  0x39   : > { %1109 = vmatpush1.bf16.msra.mxu1 %v4015_v42  ;;  %1377 = vmatpush1.bf16.msra.mxu0 %v3872_v6 }
  0x3a   : > { %1110 = vmatprep.subr.bf16.mxu1 %v4021_v43  ;;  %1378 = vmatprep.subr.bf16.mxu0 %v3882_v8 }
  0x3b   : > { %1408 = vmatprep.mubr.bf16.mxu0 %v4675_v4 }
  0x3c   : > { %3233 = vmatmul.mubr.msk.bf16.gmra.mrb[12].mxu1 %vm721_vm1, %v3488_v30 }
  0x3d   : > { %1111 = vmatpush1.bf16.msra.mxu1 %v4029_v44  ;;  %1138 = vmatprep.mubr.bf16.mxu1 %v4675_v4 }
  0x3e   : > { %1112 = vmatprep.subr.bf16.mxu1 %v4036_v45  ;;  %1379 = vmatpush1.bf16.msra.mxu0 %v3890_v10 }
  0x3f   : > { %1380 = vmatprep.subr.bf16.mxu0 %v3899_v13 }
  0x41   : > { %1113 = vmatpush1.bf16.msra.mxu1 %v4045_v46 }
  0x42   : > { %1114 = vmatprep.subr.bf16.mxu1 %v4052_v47  ;;  %1381 = vmatpush1.bf16.msra.mxu0 %v3905_v15 }
  0x43   : > { %1382 = vmatprep.subr.bf16.mxu0 %v3917_v19 }
  0x45   : > { %1115 = vmatpush1.bf16.msra.mxu1 %v4060_v48 }
  0x46   : > { %1116 = vmatprep.subr.bf16.mxu1 %v4066_v49  ;;  %1383 = vmatpush1.bf16.msra.mxu0 %v3925_v21 }
  0x47   : > { %1384 = vmatprep.subr.bf16.mxu0 %v3931_v22 }
  0x49   : > { %1117 = vmatpush1.bf16.msra.mxu1 %v4074_v50 }
  0x4a   : > { %1118 = vmatprep.subr.bf16.mxu1 %v4080_v51  ;;  %1385 = vmatpush1.bf16.msra.mxu0 %v3941_v24 }
  0x4b   : > { %1386 = vmatprep.subr.bf16.mxu0 %v3954_v27 }
  0x4d   : > { %1119 = vmatpush1.bf16.msra.mxu1 %v4088_v52 }
  0x4e   : > { %1120 = vmatprep.subr.bf16.mxu1 %v4094_v53  ;;  %1387 = vmatpush1.bf16.msra.mxu0 %v3962_v31 }
  0x4f   : > { %1388 = vmatprep.subr.bf16.mxu0 %v3970_v33 }
  0x51   : > { %1121 = vmatpush1.bf16.msra.mxu1 %v4102_v54 }
  0x52   : > { %1417 = vmatprep.subr.bf16.mxu1 %v3975_v34  ;;  %1389 = vmatpush1.bf16.msra.mxu0 %v3982_v35 }
  0x53   : > { %1390 = vmatprep.subr.bf16.mxu0 %v3989_v36 }
  0x54   : > { %1139 = vmatmul.mubr.bf16.vlgmr.msra.gmra.mrb[16].mxu1 %v872_v41 }
  0x55   : > { %1418 = vmatpush1.bf16.msra.mxu1 %v3994_v37  ;;  %1449 = vmatprep.mubr.bf16.mxu1 %v4675_v4 }
  0x56   : > { %1419 = vmatprep.subr.bf16.mxu1 %v4007_v40  ;;  %1391 = vmatpush1.bf16.msra.mxu0 %v4000_v38 }
  0x57   : > { %1688 = vmatprep.subr.bf16.mxu0 %v3862_v3 }
  0x59   : > { %1420 = vmatpush1.bf16.msra.mxu1 %v4015_v42 }
  0x5a   : > { %1421 = vmatprep.subr.bf16.mxu1 %v4021_v43 }
  0x5d   : > { %1422 = vmatpush1.bf16.msra.mxu1 %v4029_v44 }
  0x5e   : > { %1423 = vmatprep.subr.bf16.mxu1 %v4036_v45 }
  0x61   : > { %1424 = vmatpush1.bf16.msra.mxu1 %v4045_v46 }
  0x62   : > { %1425 = vmatprep.subr.bf16.mxu1 %v4052_v47 }
  0x65   : > { %1426 = vmatpush1.bf16.msra.mxu1 %v4060_v48 }
  0x66   : > { %1427 = vmatprep.subr.bf16.mxu1 %v4066_v49 }
  0x69   : > { %1428 = vmatpush1.bf16.msra.mxu1 %v4074_v50 }
  0x6a   : > { %1429 = vmatprep.subr.bf16.mxu1 %v4080_v51 }
  0x6d   : > { %1430 = vmatpush1.bf16.msra.mxu1 %v4088_v52 }
  0x6e   : > { %1431 = vmatprep.subr.bf16.mxu1 %v4094_v53 }
  0x71   : > { %1432 = vmatpush1.bf16.msra.mxu1 %v4102_v54 }
  0x72   : > { %1729 = vmatprep.subr.bf16.mxu1 %v3975_v34 }
  0xf7   : > { %v775_v55 = vpop.f32.mrb[0].mxu1 }
  0xf8   : > { %v777_v56 = vpop.f32.mrb[1].mxu1 }
  0xf9   : > { %v4130_v57 = vpop.f32.mrb[2].mxu1 }
  0xfa   : > { %v4132_v58 = vpop.f32.mrb[3].mxu1 }
  0xff   : > { %v4134_v59 = vpop.f32.mrb[4].mxu1 }
 0x100   : > { %v4136_v60 = vpop.f32.mrb[5].mxu1 }
 0x101   : > { %v4138_v61 = vpop.f32.mrb[6].mxu1 }
 0x102   : > { %v4140_v62 = vpop.f32.mrb[7].mxu1 }
 0x107   : > { %v828_v63 = vpop.f32.mrb[8].mxu1 }
 0x108   : > { %v830_v0 = vpop.f32.mrb[9].mxu1 }
 0x109   : > { %v4142_v1 = vpop.f32.mrb[10].mxu1 }
 0x10a   : > { %v4144_v2 = vpop.f32.mrb[11].mxu1 }
 0x10b   : > { %v1099_v5 = vpop.f32.mrb[0].mxu0 }
 0x10c   : > { %v1147_v7 = vadd.f32 %v1099_v5, %v775_v55  ;;  %v1101_v9 = vpop.f32.mrb[1].mxu0 }
 0x10d   : > { %v1148_v11 = vadd.f32 %v1101_v9, %v777_v56  ;;  %v1103_v12 = vpop.f32.mrb[2].mxu0 }
 0x10e   : > { %v1104_v14 = vpop.f32.mrb[3].mxu0  ;;  %v3266_v25 = vmul.f32 -1.442695, %v1147_v7 }
 0x10f   : > { %v4146_v16 = vpop.f32.mrb[12].mxu1  ;;  %v3267_v23 = vmul.f32 -1.442695, %v1148_v11  ;;  %v864_v11 = vld [vmem:[#allocation5] sm:$0xff] }
 0x110   : > { %v4148_v17 = vpop.f32.mrb[13].mxu1 }
 0x111   : > { %v4150_v18 = vpop.f32.mrb[14].mxu1  ;;  %3524 = vpow2.f32 %v3267_v23 }
 0x112   : > { %v4152_v20 = vpop.f32.mrb[15].mxu1  ;;  %3526 = vpow2.f32 %v3266_v25 }
 0x11b   : > { %v3525_v26 = vpop.eup %3524 }
 0x11c   : > { %v3527_v28 = vpop.eup %3526  ;;  %v1161_v29 = vadd.f32 1.0, %v3525_v26 }
 0x11d   : > { %v1160_v30 = vadd.f32 1.0, %v3527_v28 }
 0x11e   : > { %3528 = vrcp.f32 %v1161_v29 }
 0x11f   : > { %3530 = vrcp.f32 %v1160_v30 }
 0x127   : > { %v1140_v32 = vpop.f32.mrb[16].mxu1 }
 0x128   : > { %v1149_v39 = vadd.f32 %v1140_v32, %v828_v63  ;;  %v1142_v41 = vpop.f32.mrb[17].mxu1  ;;  %v3529_v12 = vpop.eup %3528 }
 0x129   : > { %v1150_v55 = vadd.f32 %v1142_v41, %v830_v0  ;;  %v1144_v56 = vpop.f32.mrb[18].mxu1  ;;  %v3531_v7 = vpop.eup %3530  ;;  %v1170_v25 = vmul.f32 %v3529_v12, %v864_v11 }
 0x12a   : > { %v3268_v5 = vmul.f32 -1.442695, %v1149_v39  ;;  %v1145_v9 = vpop.f32.mrb[19].mxu1 }
 0x12b   : > { %3532 = vtanh.f32 %v1150_v55 }
 0x12c   : > { %3534 = vpow2.f32 %v3268_v5 }
 0x135   : > { %v3533_v14 = vpop.eup %3532 }
 0x136   : > { %v3535_v23 = vpop.eup %3534  ;;  %v1171_v4 = vmul.f32 %v3533_v14, %v3531_v7 }
 0x137   : > { %v1162_v26 = vadd.f32 1.0, %v3535_v23 }
 0x138   : > { %v4154_v28 = vadd.f32 %v1171_v4, %v1170_v25  ;;  %v4682_v4 = vmov 0  }
 0x139   : > { %3536 = vrcp.f32 %v1162_v26 }
 0x13a   : > { %3538 = vtanh.f32 %v4154_v28 }
 0x143   : > { %v3537_v63 = vpop.eup %3536 }
 0x144   : > { %v3539_v0 = vpop.eup %3538 }
 0x145   : > { %v1174_v29 = vmul.f32 %v3539_v0, %v3537_v63 }
 0x147   : > { %1175 = vst [vmem:[#allocation3] sm:$0xff] %v1174_v29  ;;  %v1183_v30 = vpack.c.bf16 %v1174_v29, %v1174_v29 }
 0x149   : > { %1409 = vmatmul.mubr.bf16.vlgmr.msra.gmra.mrb[4].mxu0 %v1183_v30  ;;  %1450 = vmatmul.mubr.bf16.vlgmr.msra.gmra.mrb[20].mxu1 %v1183_v30 }
 0x14a   : > { %1689 = vmatpush1.bf16.msra.mxu0 %v3872_v6  ;;  %1730 = vmatpush1.bf16.msra.mxu1 %v3994_v37 }
 0x14b   : > { %1690 = vmatprep.subr.bf16.mxu0 %v3882_v8  ;;  %1731 = vmatprep.subr.bf16.mxu1 %v4007_v40 }
 0x14c   : > { %1720 = vmatprep.mubr.bf16.mxu0 %v4682_v4  ;;  %1761 = vmatprep.mubr.bf16.mxu1 %v4682_v4 }
 0x14e   : > { %1691 = vmatpush1.bf16.msra.mxu0 %v3890_v10  ;;  %1732 = vmatpush1.bf16.msra.mxu1 %v4015_v42 }
 0x14f   : > { %1692 = vmatprep.subr.bf16.mxu0 %v3899_v13  ;;  %1733 = vmatprep.subr.bf16.mxu1 %v4021_v43 }
 0x152   : > { %1693 = vmatpush1.bf16.msra.mxu0 %v3905_v15  ;;  %1734 = vmatpush1.bf16.msra.mxu1 %v4029_v44 }
 0x153   : > { %1694 = vmatprep.subr.bf16.mxu0 %v3917_v19  ;;  %1735 = vmatprep.subr.bf16.mxu1 %v4036_v45 }
 0x156   : > { %1695 = vmatpush1.bf16.msra.mxu0 %v3925_v21  ;;  %1736 = vmatpush1.bf16.msra.mxu1 %v4045_v46 }
 0x157   : > { %1696 = vmatprep.subr.bf16.mxu0 %v3931_v22  ;;  %1737 = vmatprep.subr.bf16.mxu1 %v4052_v47 }
 0x15a   : > { %1697 = vmatpush1.bf16.msra.mxu0 %v3941_v24  ;;  %1738 = vmatpush1.bf16.msra.mxu1 %v4060_v48 }
 0x15b   : > { %1698 = vmatprep.subr.bf16.mxu0 %v3954_v27  ;;  %1739 = vmatprep.subr.bf16.mxu1 %v4066_v49 }
 0x15e   : > { %1699 = vmatpush1.bf16.msra.mxu0 %v3962_v31  ;;  %1740 = vmatpush1.bf16.msra.mxu1 %v4074_v50 }
 0x15f   : > { %1700 = vmatprep.subr.bf16.mxu0 %v3970_v33  ;;  %1741 = vmatprep.subr.bf16.mxu1 %v4080_v51 }
 0x162   : > { %1701 = vmatpush1.bf16.msra.mxu0 %v3982_v35  ;;  %1742 = vmatpush1.bf16.msra.mxu1 %v4088_v52 }
 0x163   : > { %1702 = vmatprep.subr.bf16.mxu0 %v3989_v36  ;;  %1743 = vmatprep.subr.bf16.mxu1 %v4094_v53 }
 0x166   : > { %1703 = vmatpush1.bf16.msra.mxu0 %v4000_v38  ;;  %1744 = vmatpush1.bf16.msra.mxu1 %v4102_v54 }
 0x167   : > { %2000 = vmatprep.subr.bf16.mxu0 %v3862_v3  ;;  %2041 = vmatprep.subr.bf16.mxu1 %v3975_v34 }
 0x21c   : > { %v1410_v32 = vpop.f32.mrb[4].mxu0  ;;  %v1451_v39 = vpop.f32.mrb[20].mxu1 }
 0x21d   : > { %v1458_v41 = vadd.f32 %v1410_v32, %v4130_v57  ;;  %v1460_v55 = vadd.f32 %v1451_v39, %v4142_v1  ;;  %v1412_v56 = vpop.f32.mrb[5].mxu0  ;;  %v1453_v5 = vpop.f32.mrb[21].mxu1 }
 0x21e   : > { %v1459_v9 = vadd.f32 %v1412_v56, %v4132_v58  ;;  %v1461_v12 = vadd.f32 %v1453_v5, %v4144_v2  ;;  %v1414_v11 = vpop.f32.mrb[6].mxu0  ;;  %v1455_v7 = vpop.f32.mrb[22].mxu1 }
 0x21f   : > { %v3301_v14 = vmul.f32 -1.442695, %v1458_v41  ;;  %v1415_v23 = vpop.f32.mrb[7].mxu0  ;;  %v1456_v25 = vpop.f32.mrb[23].mxu1  ;;  %v3303_v34 = vmul.f32 -1.442695, %v1460_v55 }
 0x220   : > { %v3302_v3 = vmul.f32 -1.442695, %v1459_v9 }
 0x221   : > { %3540 = vpow2.f32 %v3301_v14 }
 0x222   : > { %3542 = vpow2.f32 %v3302_v3 }
 0x223   : > { %3544 = vtanh.f32 %v1461_v12 }
 0x224   : > { %3546 = vpow2.f32 %v3303_v34 }
 0x22b   : > { %v3541_v26 = vpop.eup %3540 }
 0x22c   : > { %v1471_v63 = vadd.f32 1.0, %v3541_v26  ;;  %v3543_v57 = vpop.eup %3542 }
 0x22d   : > { %v1472_v1 = vadd.f32 1.0, %v3543_v57  ;;  %v3545_v58 = vpop.eup %3544 }
 0x22e   : > { %3548 = vrcp.f32 %v1471_v63  ;;  %v3547_v0 = vpop.eup %3546 }
 0x22f   : > { %3550 = vrcp.f32 %v1472_v1  ;;  %v1473_v32 = vadd.f32 1.0, %v3547_v0 }
 0x231   : > { %3552 = vrcp.f32 %v1473_v32 }
 0x238   : > { %v3549_v2 = vpop.eup %3548 }
 0x239   : > { %v1482_v29 = vmul.f32 %v3549_v2, %v3545_v58  ;;  %v3551_v30 = vpop.eup %3550 }
 0x23a   : > { %v1481_v39 = vmul.f32 %v3551_v30, %v4154_v28 }
 0x23b   : > { %v3553_v55 = vpop.eup %3552 }
 0x23c   : > { %v4196_v41 = vadd.f32 %v1482_v29, %v1481_v39 }
 0x23e   : > { %3554 = vtanh.f32 %v4196_v41 }
 0x248   : > { %v3555_v56 = vpop.eup %3554 }
 0x249   : > { %v1485_v5 = vmul.f32 %v3555_v56, %v3553_v55 }
 0x24b   : > { %1487 = vst [vmem:[#allocation3 + $0x8] sm:$0xff] %v1485_v5  ;;  %v1495_v9 = vpack.c.bf16 %v1485_v5, %v1485_v5 }
 0x24d   : > { %1721 = vmatmul.mubr.bf16.vlgmr.msra.gmra.mrb[8].mxu0 %v1495_v9  ;;  %1762 = vmatmul.mubr.bf16.vlgmr.msra.gmra.mrb[24].mxu1 %v1495_v9 }
 0x24e   : > { %2001 = vmatpush1.bf16.msra.mxu0 %v3872_v6  ;;  %2042 = vmatpush1.bf16.msra.mxu1 %v3994_v37 }
 0x24f   : > { %2002 = vmatprep.subr.bf16.mxu0 %v3882_v8  ;;  %2043 = vmatprep.subr.bf16.mxu1 %v4007_v40 }
 0x250   : > { %2032 = vmatprep.mubr.bf16.mxu0 %v4682_v4  ;;  %2073 = vmatprep.mubr.bf16.mxu1 %v4682_v4 }
 0x252   : > { %2003 = vmatpush1.bf16.msra.mxu0 %v3890_v10  ;;  %2044 = vmatpush1.bf16.msra.mxu1 %v4015_v42 }
 0x253   : > { %2004 = vmatprep.subr.bf16.mxu0 %v3899_v13  ;;  %2045 = vmatprep.subr.bf16.mxu1 %v4021_v43 }
 0x256   : > { %2005 = vmatpush1.bf16.msra.mxu0 %v3905_v15  ;;  %2046 = vmatpush1.bf16.msra.mxu1 %v4029_v44 }
 0x257   : > { %2006 = vmatprep.subr.bf16.mxu0 %v3917_v19  ;;  %2047 = vmatprep.subr.bf16.mxu1 %v4036_v45 }
 0x25a   : > { %2007 = vmatpush1.bf16.msra.mxu0 %v3925_v21  ;;  %2048 = vmatpush1.bf16.msra.mxu1 %v4045_v46 }
 0x25b   : > { %2008 = vmatprep.subr.bf16.mxu0 %v3931_v22  ;;  %2049 = vmatprep.subr.bf16.mxu1 %v4052_v47 }
 0x25e   : > { %2009 = vmatpush1.bf16.msra.mxu0 %v3941_v24  ;;  %2050 = vmatpush1.bf16.msra.mxu1 %v4060_v48 }
 0x25f   : > { %2010 = vmatprep.subr.bf16.mxu0 %v3954_v27  ;;  %2051 = vmatprep.subr.bf16.mxu1 %v4066_v49 }
 0x262   : > { %2011 = vmatpush1.bf16.msra.mxu0 %v3962_v31  ;;  %2052 = vmatpush1.bf16.msra.mxu1 %v4074_v50 }
 0x263   : > { %2012 = vmatprep.subr.bf16.mxu0 %v3970_v33  ;;  %2053 = vmatprep.subr.bf16.mxu1 %v4080_v51 }
 0x266   : > { %2013 = vmatpush1.bf16.msra.mxu0 %v3982_v35  ;;  %2054 = vmatpush1.bf16.msra.mxu1 %v4088_v52 }
 0x267   : > { %2014 = vmatprep.subr.bf16.mxu0 %v3989_v36  ;;  %2055 = vmatprep.subr.bf16.mxu1 %v4094_v53 }
 0x26a   : > { %2015 = vmatpush1.bf16.msra.mxu0 %v4000_v38  ;;  %2056 = vmatpush1.bf16.msra.mxu1 %v4102_v54 }
 0x320   : > { %v1722_v6 = vpop.f32.mrb[8].mxu0  ;;  %v1763_v8 = vpop.f32.mrb[24].mxu1 }
 0x321   : > { %v1770_v10 = vadd.f32 %v1722_v6, %v4134_v59  ;;  %v1772_v13 = vadd.f32 %v1763_v8, %v4146_v16  ;;  %v1724_v15 = vpop.f32.mrb[9].mxu0  ;;  %v1765_v19 = vpop.f32.mrb[25].mxu1 }
 0x322   : > { %v1771_v21 = vadd.f32 %v1724_v15, %v4136_v60  ;;  %v1773_v22 = vadd.f32 %v1765_v19, %v4148_v17  ;;  %v1726_v24 = vpop.f32.mrb[10].mxu0  ;;  %v1767_v27 = vpop.f32.mrb[26].mxu1 }
 0x323   : > { %v3336_v31 = vmul.f32 -1.442695, %v1770_v10  ;;  %v1727_v33 = vpop.f32.mrb[11].mxu0  ;;  %v1768_v35 = vpop.f32.mrb[27].mxu1  ;;  %v3338_v37 = vmul.f32 -1.442695, %v1772_v13 }
 0x324   : > { %v3337_v36 = vmul.f32 -1.442695, %v1771_v21 }
 0x325   : > { %3556 = vpow2.f32 %v3336_v31 }
 0x326   : > { %3558 = vpow2.f32 %v3337_v36 }
 0x327   : > { %3560 = vtanh.f32 %v1773_v22 }
 0x328   : > { %3562 = vpow2.f32 %v3338_v37 }
 0x32f   : > { %v3557_v38 = vpop.eup %3556 }
 0x330   : > { %v1783_v40 = vadd.f32 1.0, %v3557_v38  ;;  %v3559_v42 = vpop.eup %3558 }
 0x331   : > { %v1784_v43 = vadd.f32 1.0, %v3559_v42  ;;  %v3561_v44 = vpop.eup %3560 }
 0x332   : > { %3564 = vrcp.f32 %v1783_v40  ;;  %v3563_v45 = vpop.eup %3562 }
 0x333   : > { %3566 = vrcp.f32 %v1784_v43  ;;  %v1785_v49 = vadd.f32 1.0, %v3563_v45 }
 0x335   : > { %3568 = vrcp.f32 %v1785_v49 }
 0x33c   : > { %v3565_v46 = vpop.eup %3564 }
 0x33d   : > { %v1794_v47 = vmul.f32 %v3565_v46, %v3561_v44  ;;  %v3567_v48 = vpop.eup %3566 }
 0x33e   : > { %v1793_v50 = vmul.f32 %v3567_v48, %v4196_v41 }
 0x33f   : > { %v3569_v52 = vpop.eup %3568 }
 0x340   : > { %v1795_v51 = vadd.f32 %v1794_v47, %v1793_v50 }
 0x342   : > { %3570 = vtanh.f32 %v1795_v51 }
 0x34c   : > { %v3571_v53 = vpop.eup %3570 }
 0x34d   : > { %v1797_v54 = vmul.f32 %v3571_v53, %v3569_v52 }
 0x34f   : > { %1799 = vst [vmem:[#allocation3 + $0x10] sm:$0xff] %v1797_v54  ;;  %v1807_v59 = vpack.c.bf16 %v1797_v54, %v1797_v54 }
 0x351   : > { %2033 = vmatmul.mubr.bf16.vlgmr.msra.gmra.mrb[12].mxu0 %v1807_v59  ;;  %2074 = vmatmul.mubr.bf16.vlgmr.msra.gmra.mrb[28].mxu1 %v1807_v59 }
 0x424   : > { %v2034_v60 = vpop.f32.mrb[12].mxu0  ;;  %v2075_v16 = vpop.f32.mrb[28].mxu1 }
 0x425   : > { %v2082_v17 = vadd.f32 %v2034_v60, %v4138_v61  ;;  %v2084_v28 = vadd.f32 %v2075_v16, %v4150_v18  ;;  %v2036_v4 = vpop.f32.mrb[13].mxu0  ;;  %v2077_v12 = vpop.f32.mrb[29].mxu1 }
 0x426   : > { %v2083_v11 = vadd.f32 %v2036_v4, %v4140_v62  ;;  %v2085_v7 = vadd.f32 %v2077_v12, %v4152_v20  ;;  %v2038_v14 = vpop.f32.mrb[14].mxu0  ;;  %v2079_v23 = vpop.f32.mrb[30].mxu1 }
 0x427   : > { %v3371_v25 = vmul.f32 -1.442695, %v2082_v17  ;;  %v2039_v3 = vpop.f32.mrb[15].mxu0  ;;  %v2080_v34 = vpop.f32.mrb[31].mxu1  ;;  %v3373_v63 = vmul.f32 -1.442695, %v2084_v28 }
 0x428   : > { %v3372_v26 = vmul.f32 -1.442695, %v2083_v11 }
 0x429   : > { %3572 = vpow2.f32 %v3371_v25 }
 0x42a   : > { %3574 = vpow2.f32 %v3372_v26 }
 0x42b   : > { %3576 = vtanh.f32 %v2085_v7 }
 0x42c   : > { %3578 = vpow2.f32 %v3373_v63 }
 0x433   : > { %v3573_v57 = vpop.eup %3572 }
 0x434   : > { %v2095_v1 = vadd.f32 1.0, %v3573_v57  ;;  %v3575_v61 = vpop.eup %3574 }
 0x435   : > { %v2096_v18 = vadd.f32 1.0, %v3575_v61  ;;  %v3577_v62 = vpop.eup %3576 }
 0x436   : > { %3580 = vrcp.f32 %v2095_v1  ;;  %v3579_v58 = vpop.eup %3578 }
 0x437   : > { %3582 = vrcp.f32 %v2096_v18  ;;  %v2097_v29 = vadd.f32 1.0, %v3579_v58 }
 0x439   : > { %3584 = vrcp.f32 %v2097_v29 }
 0x440   : > { %v3581_v20 = vpop.eup %3580 }
 0x441   : > { %v2106_v0 = vmul.f32 %v3581_v20, %v3577_v62  ;;  %v3583_v2 = vpop.eup %3582 }
 0x442   : > { %v2105_v30 = vmul.f32 %v3583_v2, %v1795_v51 }
 0x443   : > { %v3585_v39 = vpop.eup %3584 }
 0x444   : > { %v2107_v32 = vadd.f32 %v2106_v0, %v2105_v30 }
 0x446   : > { %3586 = vtanh.f32 %v2107_v32  ;;  %2113 = vst [vmem:[#allocation5] sm:$0xff] %v2107_v32  ;;  %2119 = vst [vmem:[%s4672_s15] sm:$0xff] (!%p3374_p6), %v2107_v32 }
 0x44d   : > { %2117 = sbr.rel (%p3374_p6) target bundleno = 1109 (0x455), region = 72 }
 0x450   : > { %v3587_v41 = vpop.eup %3586 }
 0x451   : > { %v2109_v55 = vmul.f32 %v3587_v41, %v3585_v39 }
 0x453   : > { %2111 = vst [vmem:[#allocation3 + $0x18] sm:$0xff] %v2109_v55  ;;  %2112 = vst [vmem:[#allocation4] sm:$0xff] %v2109_v55 }
 0x454   : > { %2118 = vst [vmem:[%s4671_s14] sm:$0xff] %v2109_v55 }
 0x455 PF: > { %v3588_v56 = vld [vmem:[%s4664_s7 + $0x4] ss:$8 sps:$4 sm:$0xff]   ;;  %v4683_v5 = vmov 0   ;;  %v3590_v9 = vld [vmem:[%s4664_s7] ss:$8 sps:$4 sm:$0xff]   ;;  %v2122_v46 = vld [vmem:[#allocation3 + $0x10] sm:$0xff]  ;;  %v2144_v12 = vlaneseq }
 0x456   : > { %2266 = vmatprep.mubr.bf16.mxu0 %v4683_v5  ;;  %2427 = vmatprep.mubr.bf16.mxu1 %v4683_v5  ;;  %v3591_v6 = vld [vmem:[%s4664_s7 + $0x14] ss:$8 sps:$4 sm:$0xff]   ;;  %v3593_v8 = vld [vmem:[%s4664_s7 + $0x10] ss:$8 sps:$4 sm:$0xff]   ;;  %v3594_v10 = vld [vmem:[%s4664_s7 + $0x24] ss:$8 sps:$4 sm:$0xff]  }
 0x457   : > { %2234 = vmatprep.subr.bf16.mxu0 %v3588_v56  ;;  %v3596_v13 = vld [vmem:[%s4664_s7 + $0x20] ss:$8 sps:$4 sm:$0xff]   ;;  %v3597_v15 = vld [vmem:[%s4664_s7 + $0x34] ss:$8 sps:$4 sm:$0xff]   ;;  %v3599_v19 = vld [vmem:[%s4664_s7 + $0x30] ss:$8 sps:$4 sm:$0xff]  }
 0x458   : > { %2235 = vmatpush1.bf16.msra.mxu0 %v3590_v9  ;;  %v3600_v21 = vld [vmem:[%s4664_s7 + $0x44] ss:$8 sps:$4 sm:$0xff]   ;;  %v3602_v22 = vld [vmem:[%s4664_s7 + $0x40] ss:$8 sps:$4 sm:$0xff]   ;;  %v3603_v24 = vld [vmem:[%s4664_s7 + $0x54] ss:$8 sps:$4 sm:$0xff]  }
 0x459   : > { %2236 = vmatprep.subr.bf16.mxu0 %v3591_v6  ;;  %v3605_v27 = vld [vmem:[%s4664_s7 + $0x50] ss:$8 sps:$4 sm:$0xff]   ;;  %v3606_v31 = vld [vmem:[%s4664_s7 + $0x64] ss:$8 sps:$4 sm:$0xff]   ;;  %v3608_v33 = vld [vmem:[%s4664_s7 + $0x60] ss:$8 sps:$4 sm:$0xff]  }
 0x45a   : > { %v3609_v35 = vld [vmem:[%s4664_s7 + $0x74] ss:$8 sps:$4 sm:$0xff]   ;;  %v3611_v36 = vld [vmem:[%s4664_s7 + $0x70] ss:$8 sps:$4 sm:$0xff]   ;;  %v2120_v37 = vld [vmem:[#allocation3] sm:$0xff]  ;;  %v2145_v11 = vshrl.u32 %v2144_v12, 7 }
 0x45b   : > { %v2121_v38 = vld [vmem:[#allocation3 + $0x8] sm:$0xff]  ;;  %v3617_v44 = vld [vmem:[%s4662_s5 + $0x14] ss:$8 sps:$4 sm:$0xff]   ;;  %v3615_v45 = vld [vmem:[%s4662_s5 + $0x10] ss:$8 sps:$4 sm:$0xff]   ;;  %vm2610_vm2 = vcmask 261120  }
 0x45c   : > { %2237 = vmatpush1.bf16.msra.mxu0 %v3593_v8  ;;  %v3614_v40 = vld [vmem:[%s4662_s5 + $0x4] ss:$8 sps:$4 sm:$0xff]   ;;  %v4300_v42 = vpack.c.bf16 %v2121_v38, %v2120_v37  ;;  %v3612_v43 = vld [vmem:[%s4662_s5] ss:$8 sps:$4 sm:$0xff]   ;;  %v2123_v47 = vld [vmem:[#allocation3 + $0x18] sm:$0xff]  ;;  %v4356_v7 = vsub.s32 0, %v2145_v11 }
 0x45d   : > { %2238 = vmatprep.subr.bf16.mxu0 %v3594_v10  ;;  %v3620_v48 = vld [vmem:[%s4662_s5 + $0x24] ss:$8 sps:$4 sm:$0xff]   ;;  %v4316_v49 = vpack.c.bf16 %v2123_v47, %v2122_v46  ;;  %v3618_v50 = vld [vmem:[%s4662_s5 + $0x20] ss:$8 sps:$4 sm:$0xff]   ;;  %v3623_v51 = vld [vmem:[%s4662_s5 + $0x34] ss:$8 sps:$4 sm:$0xff]  }
 0x45e   : > { %v3621_v52 = vld [vmem:[%s4662_s5 + $0x30] ss:$8 sps:$4 sm:$0xff]   ;;  %v3626_v53 = vld [vmem:[%s4662_s5 + $0x44] ss:$8 sps:$4 sm:$0xff]   ;;  %v3624_v54 = vld [vmem:[%s4662_s5 + $0x40] ss:$8 sps:$4 sm:$0xff]  }
 0x45f   : > { %v3629_v59 = vld [vmem:[%s4662_s5 + $0x54] ss:$8 sps:$4 sm:$0xff]   ;;  %v3627_v60 = vld [vmem:[%s4662_s5 + $0x50] ss:$8 sps:$4 sm:$0xff]   ;;  %v3632_v16 = vld [vmem:[%s4662_s5 + $0x64] ss:$8 sps:$4 sm:$0xff]  }
 0x460   : > { %2239 = vmatpush1.bf16.msra.mxu0 %v3596_v13  ;;  %v3630_v17 = vld [vmem:[%s4662_s5 + $0x60] ss:$8 sps:$4 sm:$0xff]   ;;  %v3635_v28 = vld [vmem:[%s4662_s5 + $0x74] ss:$8 sps:$4 sm:$0xff]   ;;  %v3633_v4 = vld [vmem:[%s4662_s5 + $0x70] ss:$8 sps:$4 sm:$0xff]  }
 0x461   : > { %2240 = vmatprep.subr.bf16.mxu0 %v3597_v15  ;;  %v2142_v14 = vld [vmem:[%s4665_s8] sm:$0x3]  ;;  %v4361_v23 = vsub.s32 1, %v2145_v11  ;;  %s3725_s18 = smov 64   ;;  %s3727_s26 = smov 32   ;;  %vm2742_vm3 = vcmask 523264  }
 0x462   : > { %v2147_v25 = vrot.slane %v2142_v14, %v4356_v7  ;;  %v2464_v41 = vld [vmem:[%s4663_s6] sm:$0x3]  ;;  %vm2747_vm4 = vcmask 785408   ;;  %s4684_s29 = sld [smem:[#allocation9_spill]] }
 0x463   : > { %v2151_v3 = vrot.slane %v2142_v14, %v4361_v23  ;;  %v2469_v55 = vrot.slane %v2464_v41, %v4356_v7  ;;  %v2473_v56 = vrot.slane %v2464_v41, %v4361_v23  ;;  %v3654_v41 = vld [vmem:[%s4666_s9 + $0x64] ss:$8 sps:$4 sm:$0xff]  }
 0x464   : > { %2241 = vmatpush1.bf16.msra.mxu0 %v3599_v19 }
 0x465   : > { %2242 = vmatprep.subr.bf16.mxu0 %v3600_v21 }
 0x468   : > { %2243 = vmatpush1.bf16.msra.mxu0 %v3602_v22 }
 0x469   : > { %2244 = vmatprep.subr.bf16.mxu0 %v3603_v24 }
 0x46c   : > { %2245 = vmatpush1.bf16.msra.mxu0 %v3605_v27 }
 0x46d   : > { %2246 = vmatprep.subr.bf16.mxu0 %v3606_v31 }
 0x470   : > { %2247 = vmatpush1.bf16.msra.mxu0 %v3608_v33 }
 0x471   : > { %2248 = vmatprep.subr.bf16.mxu0 %v3609_v35 }
 0x474   : > { %2249 = vmatpush1.bf16.msra.mxu0 %v3611_v36 }
 0x475   : > { %2556 = vmatprep.subr.bf16.mxu0 %v3614_v40 }
 0x477   : > { %2267 = vmatmul.mubr.bf16.vlgmr.msra.gmra.mrb[16].mxu0 %v4300_v42 }
 0x478   : > { %2557 = vmatpush1.bf16.msra.mxu0 %v3612_v43  ;;  %2276 = vmatprep.mubr.bf16.mxu0 %v4683_v5 }
 0x479   : > { %2558 = vmatprep.subr.bf16.mxu0 %v3617_v44 }
 0x47c   : > { %2559 = vmatpush1.bf16.msra.mxu0 %v3615_v45 }
 0x47d   : > { %2560 = vmatprep.subr.bf16.mxu0 %v3620_v48 }
 0x47f   : > { %2277 = vmatmul.mubr.bf16.gmra.mrb[20].mxu0 %v4316_v49 }
 0x480   : > { %2561 = vmatpush1.bf16.msra.mxu0 %v3618_v50  ;;  %2588 = vmatprep.mubr.bf16.mxu0 %v4683_v5 }
 0x481   : > { %2562 = vmatprep.subr.bf16.mxu0 %v3623_v51 }
 0x484   : > { %2563 = vmatpush1.bf16.msra.mxu0 %v3621_v52 }
 0x485   : > { %2564 = vmatprep.subr.bf16.mxu0 %v3626_v53 }
 0x488   : > { %2565 = vmatpush1.bf16.msra.mxu0 %v3624_v54 }
 0x489   : > { %2566 = vmatprep.subr.bf16.mxu0 %v3629_v59 }
 0x48c   : > { %2567 = vmatpush1.bf16.msra.mxu0 %v3627_v60 }
 0x48d   : > { %2568 = vmatprep.subr.bf16.mxu0 %v3632_v16 }
 0x490   : > { %2569 = vmatpush1.bf16.msra.mxu0 %v3630_v17 }
 0x491   : > { %2570 = vmatprep.subr.bf16.mxu0 %v3635_v28 }
 0x494   : > { %2571 = vmatpush1.bf16.msra.mxu0 %v3633_v4 }
 0x497   : > { %2589 = vmatmul.mubr.bf16.vlgmr.msra.gmra.mrb[24].mxu0 %v4300_v42 }
 0x498   : > { %2598 = vmatprep.mubr.bf16.mxu0 %v4683_v5 }
 0x49f   : > { %2599 = vmatmul.mubr.bf16.gmra.mrb[28].mxu0 %v4316_v49 }
 0x54a   : > { %v2268_v34 = vpop.f32.mrb[16].mxu0 }
 0x54b   : > { %v2269_v26 = vadd.f32 %v2268_v34, %v2147_v25  ;;  %v2270_v63 = vpop.f32.mrb[17].mxu0 }
 0x54c   : > { %v2271_v57 = vadd.f32 %v2270_v63, %v2151_v3  ;;  %v2272_v1 = vpop.f32.mrb[18].mxu0 }
 0x54d   : > { %2609 = vst [vmem:[%s3842_s21] sm:$0xff] %v2269_v26  ;;  %v2273_v61 = vadd.f32 %v2272_v1, %v2147_v25  ;;  %v2274_v18 = vpop.f32.mrb[19].mxu0  ;;  %v3636_v1 = vld [vmem:[%s4666_s9 + $0x4] ss:$8 sps:$4 sm:$0xff]  }
 0x54e   : > { %2611 = vst.msk [vmem:[%s3842_s21 + $0x8] sm:$0xff] %vm2610_vm2, %v2271_v57  ;;  %v2275_v62 = vadd.f32 %v2274_v18, %v2151_v3  ;;  %2395 = vmatprep.subr.bf16.mxu1 %v3636_v1  ;;  %v3639_v18 = vld [vmem:[%s4666_s9 + $0x14] ss:$8 sps:$4 sm:$0xff]  }
 0x54f   : > { %2612 = vst [vmem:[%s3842_s21 + $0x10] sm:$0xff] %v2273_v61  ;;  %v3638_v61 = vld [vmem:[%s4666_s9] ss:$8 sps:$4 sm:$0xff]  }
 0x550   : > { %2613 = vst.msk [vmem:[%s3842_s21 + $0x18] sm:$0xff] %vm2610_vm2, %v2275_v62  ;;  %2396 = vmatpush1.bf16.msra.mxu1 %v3638_v61  ;;  %v3641_v62 = vld [vmem:[%s4666_s9 + $0x10] ss:$8 sps:$4 sm:$0xff]  }
 0x551   : > { %2397 = vmatprep.subr.bf16.mxu1 %v3639_v18 }
 0x552   : > { %v2278_v58 = vpop.f32.mrb[20].mxu0 }
 0x553   : > { %v2279_v20 = vadd.f32 %v2278_v58, %v2147_v25  ;;  %v2280_v0 = vpop.f32.mrb[21].mxu0  ;;  %v3642_v58 = vld [vmem:[%s4666_s9 + $0x24] ss:$8 sps:$4 sm:$0xff]  }
 0x554   : > { %v2281_v2 = vadd.f32 %v2280_v0, %v2151_v3  ;;  %v2282_v29 = vpop.f32.mrb[22].mxu0  ;;  %2398 = vmatpush1.bf16.msra.mxu1 %v3641_v62  ;;  %v3645_v0 = vld [vmem:[%s4666_s9 + $0x34] ss:$8 sps:$4 sm:$0xff]  }
 0x555   : > { %2614 = vst [vmem:[%s3842_s21 + $0x20] sm:$0xff] %v2279_v20  ;;  %v2283_v30 = vadd.f32 %v2282_v29, %v2147_v25  ;;  %v2284_v32 = vpop.f32.mrb[23].mxu0  ;;  %v3644_v20 = vld [vmem:[%s4666_s9 + $0x20] ss:$8 sps:$4 sm:$0xff]   ;;  %2399 = vmatprep.subr.bf16.mxu1 %v3642_v58  ;;  %v3648_v29 = vld [vmem:[%s4666_s9 + $0x44] ss:$8 sps:$4 sm:$0xff]  }
 0x556   : > { %2615 = vst.msk [vmem:[%s3842_s21 + $0x28] sm:$0xff] %vm2610_vm2, %v2281_v2  ;;  %v2285_v39 = vadd.f32 %v2284_v32, %v2151_v3  ;;  %v3647_v2 = vld [vmem:[%s4666_s9 + $0x30] ss:$8 sps:$4 sm:$0xff]   ;;  %v3651_v32 = vld [vmem:[%s4666_s9 + $0x54] ss:$8 sps:$4 sm:$0xff]  }
 0x557   : > { %2616 = vst [vmem:[%s3842_s21 + $0x30] sm:$0xff] %v2283_v30  ;;  %v3650_v30 = vld [vmem:[%s4666_s9 + $0x40] ss:$8 sps:$4 sm:$0xff]  }
 0x558   : > { %2617 = vst.msk [vmem:[%s3842_s21 + $0x38] sm:$0xff] %vm2610_vm2, %v2285_v39  ;;  %s3726_s21 = smov 96   ;;  %2400 = vmatpush1.bf16.msra.mxu1 %v3644_v20  ;;  %v3653_v39 = vld [vmem:[%s4666_s9 + $0x50] ss:$8 sps:$4 sm:$0xff]  }
 0x559   : > { %2401 = vmatprep.subr.bf16.mxu1 %v3645_v0 }
 0x55c   : > { %2402 = vmatpush1.bf16.msra.mxu1 %v3647_v2 }
 0x55d   : > { %2403 = vmatprep.subr.bf16.mxu1 %v3648_v29 }
 0x560   : > { %2404 = vmatpush1.bf16.msra.mxu1 %v3650_v30 }
 0x561   : > { %2405 = vmatprep.subr.bf16.mxu1 %v3651_v32 }
 0x564   : > { %2406 = vmatpush1.bf16.msra.mxu1 %v3653_v39 }
 0x565   : > { %2407 = vmatprep.subr.bf16.mxu1 %v3654_v41 }
 0x56a   : > { %v2590_v9 = vpop.f32.mrb[24].mxu0 }
 0x56b   : > { %v4382_v6 = vadd.f32 %v2590_v9, %v2469_v55  ;;  %v2592_v8 = vpop.f32.mrb[25].mxu0  ;;  %v3659_v9 = vld [vmem:[%s4666_s9 + $0x70] ss:$8 sps:$4 sm:$0xff]  }
 0x56c   : > { %v4384_v10 = vadd.f32 %v2592_v8, %v2473_v56  ;;  %v2594_v13 = vpop.f32.mrb[26].mxu0 }
 0x56d   : > { %v2596_v15 = vpop.f32.mrb[27].mxu0  ;;  %2662 = vrot.lane.b32.xlu1 %v4382_v6, %s3725_s18  ;;  %2646 = vrot.lane.b32.xlu0 %v4382_v6, %s3726_s21  ;;  %v4392_v21 = vadd.f32 %v2594_v13, %v2469_v55 }
 0x56e   : > { %v4390_v19 = vadd.f32 %v2596_v15, %v2473_v56 }
 0x571   : > { %2678 = vrot.lane.b32.xlu1 %v4382_v6, %s3727_s26  ;;  %2648 = vrot.lane.b32.xlu0 %v4392_v21, %s3726_s21 }
 0x572   : > { %v2600_v22 = vpop.f32.mrb[28].mxu0 }
 0x573   : > { %v4398_v24 = vadd.f32 %v2600_v22, %v2469_v55  ;;  %v2602_v27 = vpop.f32.mrb[29].mxu0 }
 0x574   : > { %v4400_v31 = vadd.f32 %v2602_v27, %v2473_v56  ;;  %v2604_v33 = vpop.f32.mrb[30].mxu0 }
 0x575   : > { %v4402_v35 = vadd.f32 %v2604_v33, %v2469_v55  ;;  %v2606_v36 = vpop.f32.mrb[31].mxu0  ;;  %2664 = vrot.lane.b32.xlu1 %v4392_v21, %s3725_s18  ;;  %2666 = vrot.lane.b32.xlu0 %v4398_v24, %s3725_s18  ;;  %v3656_v55 = vld [vmem:[%s4666_s9 + $0x60] ss:$8 sps:$4 sm:$0xff]  }
 0x576   : > { %v4408_v37 = vadd.f32 %v2606_v36, %v2473_v56  ;;  %v3657_v56 = vld [vmem:[%s4666_s9 + $0x74] ss:$8 sps:$4 sm:$0xff]   ;;  %2408 = vmatpush1.bf16.msra.mxu1 %v3656_v55 }
 0x577   : > { %2409 = vmatprep.subr.bf16.mxu1 %v3657_v56 }
 0x579   : > { %2650 = vrot.lane.b32.xlu1 %v4398_v24, %s3726_s21  ;;  %2652 = vrot.lane.b32.xlu0 %v4402_v35, %s3726_s21 }
 0x57a   : > { %2410 = vmatpush1.bf16.msra.mxu1 %v3659_v9 }
 0x57d   : > { %2680 = vrot.lane.b32.xlu1 %v4392_v21, %s3727_s26  ;;  %2668 = vrot.lane.b32.xlu0 %v4402_v35, %s3725_s18 }
 0x57e   : > { %2428 = vmatmul.mubr.bf16.vlgmr.msra.gmra.mrb[32].mxu1 %v4300_v42 }
 0x57f   : > { %2437 = vmatprep.mubr.bf16.mxu1 %v4683_v5 }
 0x581   : > { %2684 = vrot.lane.b32.xlu1 %v4402_v35, %s3727_s26  ;;  %2682 = vrot.lane.b32.xlu0 %v4398_v24, %s3727_s26 }
 0x586   : > { %2438 = vmatmul.mubr.bf16.gmra.mrb[36].mxu1 %v4316_v49 }
 0x5df   : > { %v2663_v38 = vpop.permute.xlu1 %2662  ;;  %v2647_v40 = vpop.permute.xlu0 %2646 }
 0x5e0   : > { %v2658_v43 = vmax.f32 %v4382_v6, %v2647_v40 }
 0x5e2   : > { %v2674_v44 = vmax.f32 %v2658_v43, %v2663_v38 }
 0x5e3   : > { %v2679_v45 = vpop.permute.xlu1 %2678  ;;  %v2649_v46 = vpop.permute.xlu0 %2648 }
 0x5e4   : > { %v2690_v47 = vmax.f32 %v2674_v44, %v2679_v45  ;;  %v2659_v54 = vmax.f32 %v4392_v21, %v2649_v46 }
 0x5e6   : > { %v4424_v48 = vmax.f32 %v2690_v47, %v4384_v10 }
 0x5e7   : > { %v2665_v50 = vpop.permute.xlu1 %2664  ;;  %v2667_v51 = vpop.permute.xlu0 %2666 }
 0x5e8   : > { %2726 = vrot.lane.b32.xlu1 %v4424_v48, %s3726_s21  ;;  %2702 = vrot.lane.b32.xlu0 %v4424_v48, %s3727_s26  ;;  %v2675_v59 = vmax.f32 %v2659_v54, %v2665_v50 }
 0x5eb   : > { %v2651_v52 = vpop.permute.xlu1 %2650  ;;  %v2653_v53 = vpop.permute.xlu0 %2652 }
 0x5ec   : > { %2714 = vrot.lane.b32.xlu0 %v4424_v48, %s3725_s18  ;;  %v2660_v60 = vmax.f32 %v4398_v24, %v2651_v52  ;;  %v2661_v4 = vmax.f32 %v4402_v35, %v2653_v53 }
 0x5ee   : > { %v2676_v11 = vmax.f32 %v2660_v60, %v2667_v51 }
 0x5ef   : > { %v2681_v16 = vpop.permute.xlu1 %2680  ;;  %v2669_v17 = vpop.permute.xlu0 %2668 }
 0x5f0   : > { %v2691_v28 = vmax.f32 %v2675_v59, %v2681_v16  ;;  %v2677_v3 = vmax.f32 %v2661_v4, %v2669_v17 }
 0x5f2   : > { %v4436_v12 = vmax.f32 %v2691_v28, %v4390_v19 }
 0x5f3   : > { %v2685_v14 = vpop.permute.xlu1 %2684  ;;  %v2683_v25 = vpop.permute.xlu0 %2682 }
 0x5f4   : > { %v2692_v34 = vmax.f32 %v2676_v11, %v2683_v25  ;;  %2716 = vrot.lane.b32.xlu0 %v4436_v12, %s3725_s18  ;;  %2704 = vrot.lane.b32.xlu1 %v4436_v12, %s3727_s26  ;;  %v2693_v26 = vmax.f32 %v2677_v3, %v2685_v14  ;;  %v2755_v58 = vsub.f32 %v4390_v19, %v4436_v12 }
 0x5f6   : > { %v4443_v63 = vmax.f32 %v2692_v34, %v4400_v31  ;;  %v4450_v57 = vmax.f32 %v2693_v26, %v4408_v37  ;;  %v2766_v30 = vmul.f32 1.442695, %v2755_v58 }
 0x5f8   : > { %2728 = vrot.lane.b32.xlu0 %v4436_v12, %s3726_s21  ;;  %2706 = vrot.lane.b32.xlu1 %v4443_v63, %s3727_s26  ;;  %v2759_v39 = vsub.f32 %v4408_v37, %v4450_v57 }
 0x5fc   : > { %2708 = vrot.lane.b32.xlu0 %v4450_v57, %s3727_s26  ;;  %2718 = vrot.lane.b32.xlu1 %v4443_v63, %s3725_s18 }
 0x600   : > { %2730 = vrot.lane.b32.xlu0 %v4443_v63, %s3726_s21  ;;  %2720 = vrot.lane.b32.xlu1 %v4450_v57, %s3725_s18 }
 0x604   : > { %2732 = vrot.lane.b32.xlu1 %v4450_v57, %s3726_s21 }
 0x65a   : > { %v2703_v8 = vpop.permute.xlu0 %2702  ;;  %v2727_v22 = vpop.permute.xlu1 %2726 }
 0x65b   : > { %v2738_v13 = vsel %vm2610_vm2, %v4424_v48, %v2703_v8 }
 0x65e   : > { %v2715_v15 = vpop.permute.xlu0 %2714 }
 0x65f   : > { %v2743_v27 = vsel %vm2742_vm3, %v2738_v13, %v2715_v15  ;;  %v2774_v15 = vmul.f32 1.442695, %v2759_v39 }
 0x660   : > { %v2748_v33 = vsel %vm2747_vm4, %v2743_v27, %v2727_v22  ;;  %v2429_v27 = vpop.f32.mrb[32].mxu1 }
 0x661   : > { %v2752_v36 = vsub.f32 %v4382_v6, %v2748_v33 }
 0x663   : > { %v2760_v38 = vmul.f32 1.442695, %v2752_v36  ;;  %v2431_v36 = vpop.f32.mrb[33].mxu1 }
 0x665   : > { %3660 = vpow2.f32 %v2760_v38 }
 0x666   : > { %v2705_v42 = vpop.permute.xlu1 %2704  ;;  %v2717_v5 = vpop.permute.xlu0 %2716 }
 0x667   : > { %v2739_v49 = vsel %vm2610_vm2, %v4436_v12, %v2705_v42  ;;  %v2757_v12 = vsub.f32 %v4400_v31, %v4443_v63  ;;  %v2303_v31 = vld [vmem:[%s4684_s29] sm:$0x3] }
 0x668   : > { %v2744_v40 = vsel %vm2742_vm3, %v2739_v49, %v2717_v5  ;;  %v2312_v33 = vrot.slane %v2303_v31, %v4361_v23  ;;  %v2433_v5 = vpop.f32.mrb[34].mxu1 }
 0x669   : > { %v2770_v22 = vmul.f32 1.442695, %v2757_v12 }
 0x66a   : > { %v2707_v43 = vpop.permute.xlu1 %2706  ;;  %v2729_v44 = vpop.permute.xlu0 %2728  ;;  %v2432_v42 = vadd.f32 %v2431_v36, %v2312_v33 }
 0x66b   : > { %v2749_v45 = vsel %vm2747_vm4, %v2744_v40, %v2729_v44  ;;  %v2740_v6 = vsel %vm2610_vm2, %v4443_v63, %v2707_v43  ;;  %v2308_v63 = vrot.slane %v2303_v31, %v4356_v7  ;;  %v2435_v43 = vpop.f32.mrb[35].mxu1 }
 0x66c   : > { %v2754_v46 = vsub.f32 %v4392_v21, %v2749_v45  ;;  %v2620_v45 = vmul.f32 1.442695, %v2432_v42 }
 0x66d   : > { %v2430_v38 = vadd.f32 %v2429_v27, %v2308_v63  ;;  %v2434_v40 = vadd.f32 %v2433_v5, %v2308_v63 }
 0x66e   : > { %v2764_v47 = vmul.f32 1.442695, %v2754_v46  ;;  %v2719_v50 = vpop.permute.xlu1 %2718  ;;  %v2709_v51 = vpop.permute.xlu0 %2708  ;;  %v2436_v46 = vadd.f32 %v2435_v43, %v2312_v33 }
 0x66f   : > { %v4523_v52 = vpop.eup %3660  ;;  %v2745_v53 = vsel %vm2742_vm3, %v2740_v6, %v2719_v50  ;;  %v2741_v16 = vsel %vm2610_vm2, %v4450_v57, %v2709_v51  ;;  %v2618_v44 = vmul.f32 1.442695, %v2430_v38  ;;  %v2439_v51 = vpop.f32.mrb[36].mxu1 }
 0x670   : > { %3662 = vpow2.f32 %v2764_v47  ;;  %2796 = vrot.lane.b32.xlu1 %v4523_v52, %s3725_s18  ;;  %2780 = vrot.lane.b32.xlu0 %v4523_v52, %s3726_s21  ;;  %v2622_v47 = vmul.f32 1.442695, %v2434_v40  ;;  %v2624_v7 = vmul.f32 1.442695, %v2436_v46  ;;  %v2440_v23 = vadd.f32 %v2439_v51, %v2308_v63 }
 0x672   : > { %v2721_v54 = vpop.permute.xlu1 %2720  ;;  %v2731_v59 = vpop.permute.xlu0 %2730 }
 0x673   : > { %v2750_v21 = vsel %vm2747_vm4, %v2745_v53, %v2731_v59  ;;  %v2746_v17 = vsel %vm2742_vm3, %v2741_v16, %v2721_v54  ;;  %v2441_v53 = vpop.f32.mrb[37].mxu1 }
 0x674   : > { %v2756_v60 = vsub.f32 %v4398_v24, %v2750_v21  ;;  %2812 = vrot.lane.b32.xlu1 %v4523_v52, %s3727_s26  ;;  %v2442_v21 = vadd.f32 %v2441_v53, %v2312_v33 }
 0x676   : > { %v2768_v28 = vmul.f32 1.442695, %v2756_v60  ;;  %v2733_v4 = vpop.permute.xlu1 %2732  ;;  %v2443_v60 = vpop.f32.mrb[38].mxu1 }
 0x677   : > { %v2751_v11 = vsel %vm2747_vm4, %v2746_v17, %v2733_v4  ;;  %v2626_v17 = vmul.f32 1.442695, %v2440_v23  ;;  %v2445_v4 = vpop.f32.mrb[39].mxu1 }
 0x678   : > { %3664 = vpow2.f32 %v2768_v28  ;;  %v2758_v14 = vsub.f32 %v4402_v35, %v2751_v11  ;;  %v2753_v35 = vsub.f32 %v4384_v10, %v4424_v48  ;;  %v2444_v28 = vadd.f32 %v2443_v60, %v2308_v63 }
 0x67a   : > { %v4541_v25 = vpop.eup %3662  ;;  %v2772_v3 = vmul.f32 1.442695, %v2758_v14  ;;  %v2762_v26 = vmul.f32 1.442695, %v2753_v35  ;;  %v2628_v35 = vmul.f32 1.442695, %v2442_v21 }
 0x67b   : > { %2782 = vrot.lane.b32.xlu1 %v4541_v25, %s3726_s21 }
 0x67c   : > { %3666 = vpow2.f32 %v2772_v3 }
 0x67d   : > { %3668 = vpow2.f32 %v2762_v26  ;;  %v2446_v26 = vadd.f32 %v2445_v4, %v2312_v33 }
 0x67f   : > { %2798 = vrot.lane.b32.xlu1 %v4541_v25, %s3725_s18 }
 0x682   : > { %v4547_v24 = vpop.eup %3664 }
 0x683   : > { %2814 = vrot.lane.b32.xlu1 %v4541_v25, %s3727_s26  ;;  %2784 = vrot.lane.b32.xlu0 %v4547_v24, %s3726_s21 }
 0x686   : > { %v4553_v34 = vpop.eup %3666 }
 0x687   : > { %2818 = vrot.lane.b32.xlu1 %v4553_v34, %s3727_s26  ;;  %2800 = vrot.lane.b32.xlu0 %v4547_v24, %s3725_s18  ;;  %v3669_v2 = vpop.eup %3668 }
 0x68b   : > { %2786 = vrot.lane.b32.xlu0 %v4553_v34, %s3726_s21 }
 0x68f   : > { %2802 = vrot.lane.b32.xlu0 %v4553_v34, %s3725_s18 }
 0x693   : > { %2816 = vrot.lane.b32.xlu0 %v4547_v24, %s3727_s26 }
 0x6e2   : > { %v2797_v1 = vpop.permute.xlu1 %2796  ;;  %v2781_v61 = vpop.permute.xlu0 %2780 }
 0x6e3   : > { %v2792_v18 = vadd.f32 %v4523_v52, %v2781_v61 }
 0x6e5   : > { %v2808_v62 = vadd.f32 %v2797_v1, %v2792_v18 }
 0x6e6   : > { %v2813_v20 = vpop.permute.xlu1 %2812 }
 0x6e7   : > { %v2824_v0 = vadd.f32 %v2813_v20, %v2808_v62  ;;  %v2630_v62 = vmul.f32 1.442695, %v2444_v28 }
 0x6e9   : > { %v2828_v29 = vadd.f32 %v3669_v2, %v2824_v0  ;;  %v2632_v0 = vmul.f32 1.442695, %v2446_v26 }
 0x6eb   : > { %3670 = vrcp.f32 %v2828_v29 }
 0x6ec   : > { %3672 = vpow2.f32 %v2766_v30 }
 0x6ed   : > { %v2783_v32 = vpop.permute.xlu1 %2782 }
 0x6ee   : > { %v2793_v48 = vadd.f32 %v4541_v25, %v2783_v32 }
 0x6f1   : > { %v2799_v10 = vpop.permute.xlu1 %2798 }
 0x6f2   : > { %v2809_v41 = vadd.f32 %v2799_v10, %v2793_v48 }
 0x6f5   : > { %v4573_v55 = vpop.eup %3670  ;;  %v2815_v56 = vpop.permute.xlu1 %2814 }
 0x6f6   : > { %v2785_v19 = vpop.permute.xlu0 %2784  ;;  %v2889_v9 = vmul.f32 %v4573_v55, %v3669_v2  ;;  %v2825_v8 = vadd.f32 %v2815_v56, %v2809_v41  ;;  %2864 = vrot.lane.b32.xlu1 %v4573_v55, %s3726_s21  ;;  %2840 = vrot.lane.b32.xlu0 %v4573_v55, %s3727_s26  ;;  %v3673_v13 = vpop.eup %3672 }
 0x6f7   : > { %v2794_v54 = vadd.f32 %v4547_v24, %v2785_v19 }
 0x6f8   : > { %2897 = vst.msk [vmem:[%s3837_s30 + $0x8] sm:$0xff] %vm2610_vm2, %v2889_v9  ;;  %v2829_v37 = vadd.f32 %v3673_v13, %v2825_v8 }
 0x6f9   : > { %v2819_v16 = vpop.permute.xlu1 %2818 }
 0x6fa   : > { %v2801_v57 = vpop.permute.xlu0 %2800  ;;  %3674 = vrcp.f32 %v2829_v37  ;;  %2852 = vrot.lane.b32.xlu0 %v4573_v55, %s3725_s18 }
 0x6fb   : > { %3676 = vpow2.f32 %v2774_v15  ;;  %v2810_v14 = vadd.f32 %v2801_v57, %v2794_v54 }
 0x6fc   : > { %3678 = vpow2.f32 %v2770_v22 }
 0x6fd   : > { %3680 = vpow2.f32 %v2618_v44 }
 0x6fe   : > { %v2787_v49 = vpop.permute.xlu0 %2786  ;;  %3682 = vpow2.f32 %v2620_v45 }
 0x6ff   : > { %v2795_v50 = vadd.f32 %v4553_v34, %v2787_v49  ;;  %3684 = vpow2.f32 %v2622_v47 }
 0x700   : > { %3686 = vpow2.f32 %v2624_v7 }
 0x701   : > { %3688 = vpow2.f32 %v2626_v17 }
 0x702   : > { %v2803_v6 = vpop.permute.xlu0 %2802  ;;  %3690 = vpow2.f32 %v2628_v35 }
 0x703   : > { %v2811_v59 = vadd.f32 %v2803_v6, %v2795_v50  ;;  %3692 = vpow2.f32 %v2630_v62 }
 0x704   : > { %v4593_v11 = vpop.eup %3674 }
 0x705   : > { %v2827_v3 = vadd.f32 %v2819_v16, %v2811_v59  ;;  %v3677_v1 = vpop.eup %3676  ;;  %v2891_v61 = vmul.f32 %v4593_v11, %v3673_v13  ;;  %2842 = vrot.lane.b32.xlu1 %v4593_v11, %s3727_s26  ;;  %2854 = vrot.lane.b32.xlu0 %v4593_v11, %s3725_s18 }
 0x706   : > { %v2817_v18 = vpop.permute.xlu0 %2816  ;;  %v3679_v2 = vpop.eup %3678 }
 0x707   : > { %v2831_v58 = vadd.f32 %v3677_v1, %v2827_v3  ;;  %v2826_v20 = vadd.f32 %v2817_v18, %v2810_v14  ;;  %2899 = vst.msk [vmem:[%s3837_s30 + $0x18] sm:$0xff] %vm2610_vm2, %v2891_v61  ;;  %v3681_v30 = vpop.eup %3680 }
 0x708   : > { %v3683_v32 = vpop.eup %3682  ;;  %2634 = vst [vmem:[%s3847_s10] sm:$0xff] %v3681_v30 }
 0x709   : > { %3694 = vrcp.f32 %v2831_v58  ;;  %v2830_v29 = vadd.f32 %v3679_v2, %v2826_v20  ;;  %2866 = vrot.lane.b32.xlu0 %v4593_v11, %s3726_s21  ;;  %v3685_v10 = vpop.eup %3684  ;;  %2635 = vst.msk [vmem:[%s3847_s10 + $0x8] sm:$0xff] %vm2610_vm2, %v3683_v32 }
 0x70a   : > { %3696 = vpow2.f32 %v2632_v0  ;;  %v3687_v48 = vpop.eup %3686  ;;  %2636 = vst [vmem:[%s3847_s10 + $0x10] sm:$0xff] %v3685_v10 }
 0x70b   : > { %3698 = vrcp.f32 %v2830_v29  ;;  %2637 = vst.msk [vmem:[%s3847_s10 + $0x18] sm:$0xff] %vm2610_vm2, %v3687_v48  ;;  %v3689_v39 = vpop.eup %3688 }
 0x70c   : > { %v3691_v41 = vpop.eup %3690  ;;  %2638 = vst [vmem:[%s3847_s10 + $0x20] sm:$0xff] %v3689_v39 }
 0x70d   : > { %v3693_v56 = vpop.eup %3692  ;;  %2639 = vst.msk [vmem:[%s3847_s10 + $0x28] sm:$0xff] %vm2610_vm2, %v3691_v41 }
 0x70e   : > { %2640 = vst [vmem:[%s3847_s10 + $0x30] sm:$0xff] %v3693_v56 }
 0x713   : > { %v3695_v19 = vpop.eup %3694 }
 0x714   : > { %v3697_v12 = vpop.eup %3696  ;;  %2846 = vrot.lane.b32.xlu0 %v3695_v19, %s3727_s26  ;;  %v2895_v13 = vmul.f32 %v3695_v19, %v3677_v1 }
 0x715   : > { %v3699_v9 = vpop.eup %3698  ;;  %2641 = vst.msk [vmem:[%s3847_s10 + $0x38] sm:$0xff] %vm2610_vm2, %v3697_v12 }
 0x716   : > { %v2893_v8 = vmul.f32 %v3699_v9, %v3679_v2  ;;  %2844 = vrot.lane.b32.xlu1 %v3699_v9, %s3727_s26  ;;  %2903 = vst.msk [vmem:[%s3837_s30 + $0x38] sm:$0xff] %vm2610_vm2, %v2895_v13 }
 0x718   : > { %2901 = vst.msk [vmem:[%s3837_s30 + $0x28] sm:$0xff] %vm2610_vm2, %v2893_v8  ;;  %2868 = vrot.lane.b32.xlu0 %v3699_v9, %s3726_s21 }
 0x71a   : > { %2856 = vrot.lane.b32.xlu1 %v3699_v9, %s3725_s18 }
 0x71e   : > { %2858 = vrot.lane.b32.xlu1 %v3695_v19, %s3725_s18 }
 0x722   : > { %2870 = vrot.lane.b32.xlu1 %v3695_v19, %s3726_s21 }
 0x768   : > { %v2841_v15 = vpop.permute.xlu0 %2840  ;;  %v2865_v22 = vpop.permute.xlu1 %2864 }
 0x769   : > { %v2876_v37 = vsel %vm2610_vm2, %v4573_v55, %v2841_v15 }
 0x76c   : > { %v2853_v57 = vpop.permute.xlu0 %2852 }
 0x76d   : > { %v2880_v31 = vsel %vm2742_vm3, %v2876_v37, %v2853_v57 }
 0x76e   : > { %v2884_v63 = vsel %vm2747_vm4, %v2880_v31, %v2865_v22 }
 0x76f   : > { %v2888_v27 = vmul.f32 %v4523_v52, %v2884_v63 }
 0x771   : > { %2896 = vst [vmem:[%s3837_s30] sm:$0xff] %v2888_v27 }
 0x777   : > { %v2843_v33 = vpop.permute.xlu1 %2842  ;;  %v2855_v36 = vpop.permute.xlu0 %2854 }
 0x778   : > { %v2877_v38 = vsel %vm2610_vm2, %v4593_v11, %v2843_v33 }
 0x779   : > { %v2881_v42 = vsel %vm2742_vm3, %v2877_v38, %v2855_v36 }
 0x77b   : > { %v2867_v5 = vpop.permute.xlu0 %2866 }
 0x77c   : > { %v2885_v55 = vsel %vm2747_vm4, %v2881_v42, %v2867_v5 }
 0x77d   : > { %v2890_v49 = vmul.f32 %v4541_v25, %v2885_v55 }
 0x77f   : > { %2898 = vst [vmem:[%s3837_s30 + $0x10] sm:$0xff] %v2890_v49 }
 0x786   : > { %v2847_v40 = vpop.permute.xlu0 %2846 }
 0x787   : > { %v2879_v51 = vsel %vm2610_vm2, %v3695_v19, %v2847_v40 }
 0x788   : > { %v2845_v43 = vpop.permute.xlu1 %2844 }
 0x789   : > { %v2878_v52 = vsel %vm2610_vm2, %v3699_v9, %v2845_v43 }
 0x78a   : > { %v2869_v45 = vpop.permute.xlu0 %2868 }
 0x78c   : > { %v2857_v44 = vpop.permute.xlu1 %2856 }
 0x78d   : > { %v2882_v46 = vsel %vm2742_vm3, %v2878_v52, %v2857_v44 }
 0x78e   : > { %v2886_v47 = vsel %vm2747_vm4, %v2882_v46, %v2869_v45 }
 0x78f   : > { %v2892_v50 = vmul.f32 %v4547_v24, %v2886_v47 }
 0x790   : > { %v2859_v7 = vpop.permute.xlu1 %2858 }
 0x791   : > { %2900 = vst [vmem:[%s3837_s30 + $0x20] sm:$0xff] %v2892_v50  ;;  %v2883_v25 = vsel %vm2742_vm3, %v2879_v51, %v2859_v7 }
 0x794   : > { %v2871_v6 = vpop.permute.xlu1 %2870 }
 0x795   : > { %v2887_v23 = vsel %vm2747_vm4, %v2883_v25, %v2871_v6 }
 0x796   : > { %v2894_v53 = vmul.f32 %v4553_v34, %v2887_v23 }
 0x798   : > { %2902 = vst [vmem:[%s3837_s30 + $0x30] sm:$0xff] %v2894_v53 }
 0x799 PF: > { %s4685_s10 = sld [smem:[#allocation7_spill]]  ;;  %s4686_s18 = sld [smem:[#allocation6_spill]] }
 0x79a   : > { %s4687_s19 = sld [smem:[#allocation8_spill]] }
 0x79f   : > { %s26_s20 = sadd.s32 1, %s4685_s10  }
 0x7a0   : > { %p23_p7 = scmp.ge.s32.totalorder %s26_s20, 4  }
 0x7a2   :  { %25 = sbr.rel (!%p23_p7) target bundleno = 2 (0x2), region = 163 }

</bundles_post_ra>
